<compile_context>
chip_gen: v7x
topology: tpu7x:2x2x1
jax: 0.10.0
libtpu: 0.0.40
codegen_flags: <defaults>
</compile_context>

<pallas_src>
from functools import partial

import jax
import jax.numpy as jnp
from jax.experimental import pallas as pl
from jax.experimental.pallas import tpu as pltpu


def _conv_rhs(wc, C_out, KD, KH, KW, W, PW, Wp):
    """Host-built im2col RHS, shape (KD*KH*Wp, C_out*W) in bf16.

    Row index r = (kd*KH + kh)*Wp + wp (wp = padded-W source position).
    Lane index L = wi*(C_out*PW) + co*PW + pw with w = 4*pw + wi, so the four
    W-positions of every pool window land in four contiguous 32-lane chunks.
    """
    wflat = wc.reshape(C_out, KD, KH, KW).astype(jnp.float32)
    co_g, kd_g, kh_g, w_g, kw_g = jnp.meshgrid(
        jnp.arange(C_out), jnp.arange(KD), jnp.arange(KH),
        jnp.arange(W), jnp.arange(KW), indexing="ij")
    vals = wflat[co_g, kd_g, kh_g, kw_g]
    row_g = (kd_g * KH + kh_g) * Wp + w_g + kw_g
    lane_g = (w_g % 4) * (C_out * PW) + co_g * PW + (w_g // 4)
    rhs = jnp.zeros((KD * KH * Wp, C_out * W), jnp.float32).at[row_g, lane_g].set(vals)
    return rhs.astype(jnp.bfloat16)


def _fused_kernel(x_ref, m_ref, blane_ref, wfc_ref, bfc_ref, out_ref):
    """conv3d + maxpool(1,4,4) + relu + fc for TB samples per grid step."""
    rhs = m_ref[...]                                           # (162, 128) bf16
    n_hi = x_ref.shape[1]                                      # 4 (H pool window)
    CW = blane_ref.shape[1]                                    # 32 = C_out * PW
    TB = out_ref.shape[0]
    DP = wfc_ref.shape[0]                                      # 16 = D_out * PH

    # Conv as n_hi well-shaped MXU matmuls; their elementwise max IS the H-pool.
    hmax = None
    for hi in range(n_hi):
        p = jnp.dot(x_ref[0, hi], rhs, preferred_element_type=jnp.float32)  # (128, 128)
        hmax = p if hmax is None else jnp.maximum(hmax, p)

    # W-pool: elementwise max of the four contiguous 32-lane chunks.
    wmax = jnp.maximum(jnp.maximum(hmax[:, 0 * CW:1 * CW], hmax[:, 1 * CW:2 * CW]),
                       jnp.maximum(hmax[:, 2 * CW:3 * CW], hmax[:, 3 * CW:4 * CW]))

    # Bias (per-channel constant, so adding after max is exact) + ReLU, in f32.
    pooled = jnp.maximum(wmax + blane_ref[...], 0.0)           # (DP*TB, CW) f32

    # Fused FC: rows are ordered (d, ph, sample), so each (d,ph) block across the
    # TB samples is a contiguous sublane-aligned slice. bf16 MXU, f32 accumulate.
    y = jnp.zeros(out_ref.shape, jnp.float32)
    for dp in range(DP):
        blk = pooled[dp * TB:(dp + 1) * TB, :].astype(jnp.bfloat16)   # (TB, 32)
        y = y + jnp.dot(blk, wfc_ref[dp], preferred_element_type=jnp.float32)
    out_ref[...] = y + bfc_ref[...]


@partial(jax.jit, static_argnames=("tb",))
def video_conv_forward(x, wc, bc, wfc, bfc, tb=8):
    """x: (N, D, C=1, H, W); wc: (C_out,1,3,3,3); bc: (C_out,);
    wfc: (F_out, F_in) PyTorch layout; bfc: (F_out,). Returns (N, F_out)."""
    N, D, C, H, W = x.shape
    assert C == 1, "VideoConv uses in_channels=1"
    assert H % 4 == 0 and W % 4 == 0
    KD = KH = KW = 3
    PAD, SD = 1, 2                              # padding=1, stride=(2,1,1), dilation=1
    D_out = (D + 2 * PAD - KD) // SD + 1
    PH, PW = H // 4, W // 4                     # MaxPool3d((1,4,4))
    C_out = wc.shape[0]
    F_out = wfc.shape[0]
    F_in = C_out * D_out * PH * PW
    assert wfc.shape[1] == F_in
    assert C_out * W == 128 and C_out * PW == 32, "layout sized for C_out=8, W=16"
    assert N % tb == 0 and (D_out * PH * tb) % 8 == 0
    G = N // tb                                 # grid length (keep >=2 / even for v7x)
    Wp, Hp = W + 2 * PAD, H + 2 * PAD
    K_im = KD * KH * Wp                         # 162: im2col contraction depth
    CW = C_out * PW                             # 32
    F_pad = ((F_out + 127) // 128) * 128        # lane-dense FC output (500 -> 512)

    # ---- wrapper-side layout prep -------------------------------------------------
    xt = jnp.transpose(x, (0, 2, 1, 3, 4)).reshape(N, D, H, W).astype(jnp.float32)
    xp = jnp.pad(xt, ((0, 0), (PAD, PAD), (PAD, PAD), (PAD, PAD)))   # (N, D+2, H+2, W+2)

    # Full im2col, grouped so that each grid step gets a dense (4, 128, 162) block:
    # rows ordered (d, ph, sample_within_block); K ordered (kd, kh, wp).
    d_idx = SD * jnp.arange(D_out)[:, None] + jnp.arange(KD)[None, :]          # (D_out, KD)
    h_idx = (4 * jnp.arange(PH)[:, None, None] + jnp.arange(4)[None, :, None]
             + jnp.arange(KH)[None, None, :])                                  # (PH, 4, KH)
    a = xp[:, d_idx]                                   # (N, D_out, KD, Hp, Wp)
    b = a[:, :, :, h_idx]                              # (N, D_out, KD, PH, 4, KH, Wp)
    b = b.reshape(G, tb, D_out, KD, PH, 4, KH, Wp)
    b = jnp.transpose(b, (0, 5, 2, 4, 1, 3, 6, 7))     # (G, hi, d, ph, s, kd, kh, wp)
    im2col = b.reshape(G, 4, D_out * PH * tb, K_im).astype(jnp.bfloat16)

    conv_rhs = _conv_rhs(wc, C_out, KD, KH, KW, W, PW, Wp)            # (162, 128) bf16
    bias_lane = jnp.repeat(bc.astype(jnp.float32), PW).reshape(1, CW)  # (1, 32) f32

    # FC weight: pad F_out->F_pad, permute PyTorch (co,d,ph,pw) columns into the
    # kernel's (d,ph) x (co,pw) block layout; stored/consumed as bf16.
    wfc_pad = jnp.zeros((F_pad, F_in), jnp.float32).at[:F_out].set(wfc.astype(jnp.float32))
    wfc_r = wfc_pad.reshape(F_pad, C_out, D_out, PH, PW)
    wfc_r = jnp.transpose(wfc_r, (2, 3, 1, 4, 0)).reshape(D_out * PH, CW, F_pad)
    wfc_r = wfc_r.astype(jnp.bfloat16)                                 # (16, 32, 512)
    bfc_pad = jnp.zeros((1, F_pad), jnp.float32).at[0, :F_out].set(bfc.astype(jnp.float32))

    # ---- fused kernel: TB samples per grid step ------------------------------------
    y_pad = pl.pallas_call(
        _fused_kernel,
        out_shape=jax.ShapeDtypeStruct((N, F_pad), jnp.float32),
        grid=(G,),
        in_specs=[
            pl.BlockSpec((1, 4, D_out * PH * tb, K_im), lambda n: (n, 0, 0, 0)),
            pl.BlockSpec((K_im, C_out * W), lambda n: (0, 0)),
            pl.BlockSpec((1, CW), lambda n: (0, 0)),
            pl.BlockSpec((D_out * PH, CW, F_pad), lambda n: (0, 0, 0)),
            pl.BlockSpec((1, F_pad), lambda n: (0, 0)),
        ],
        out_specs=pl.BlockSpec((tb, F_pad), lambda n: (n, 0)),
        compiler_params=pltpu.CompilerParams(dimension_semantics=("parallel",)),
    )(im2col, conv_rhs, bias_lane, wfc_r, bfc_pad)

    return y_pad[:, :F_out]


def reference(x, wc, bc, wfc, bfc):
    """Pure-JAX reference matching the PyTorch forward semantics."""
    xt = jnp.transpose(x, (0, 2, 1, 3, 4))
    y = jax.lax.conv_general_dilated(
        xt, wc, window_strides=(2, 1, 1), padding=((1, 1), (1, 1), (1, 1)),
        dimension_numbers=("NCDHW", "OIDHW", "NCDHW"),
        precision=jax.lax.Precision.HIGHEST)
    y = y + bc[None, :, None, None, None]
    y = jax.lax.reduce_window(y, -jnp.inf, jax.lax.max,
                              (1, 1, 1, 4, 4), (1, 1, 1, 4, 4), "VALID")
    y = jnp.maximum(y, 0.0)
    y = y.reshape(y.shape[0], -1)
    return jnp.dot(y, wfc.T, precision=jax.lax.Precision.HIGHEST) + bfc


if __name__ == "__main__":
    key = jax.random.PRNGKey(0)
    k = jax.random.split(key, 5)

    # small shapes consistent with the module: (N, D, C, H, W)
    # N=16 so that TB=8 samples/step still gives a grid of 2 (both v7x TCs busy).
    N, D, C, H, W = 16, 8, 1, 16, 16
    C_out, F_out = 8, 500
    D_out = (D + 2 - 3) // 2 + 1
    in_features = C_out * D_out * (H // 4) * (W // 4)   # 512 (module's 3630 is unreachable)

    x = jax.random.normal(k[0], (N, D, C, H, W), jnp.float32)
    wc = jax.random.normal(k[1], (C_out, C, 3, 3, 3), jnp.float32) * 0.1
    bc = jax.random.normal(k[2], (C_out,), jnp.float32) * 0.1
    wfc = jax.random.normal(k[3], (F_out, in_features), jnp.float32) * (in_features ** -0.5)
    bfc = jax.random.normal(k[4], (F_out,), jnp.float32) * 0.01

    y = video_conv_forward(x, wc, bc, wfc, bfc)
    y = jax.block_until_ready(y)
    assert y.shape == (N, F_out) and y.dtype == jnp.float32

    y_ref = reference(x, wc, bc, wfc, bfc)
    err = float(jnp.max(jnp.abs(y - y_ref)))
    assert err < 1e-1, f"mismatch vs reference (bf16 MXU path): max abs err = {err}"

    print("KERNEL_OK")
</pallas_src>

<mosaic_0001>
module attributes {stable_mosaic.version = 11 : i64} {
  func.func @_fused_kernel(%arg0: i32, %arg1: memref<1x4x128x162xbf16, #tpu.memory_space<vmem>>, %arg2: memref<162x128xbf16, #tpu.memory_space<vmem>>, %arg3: memref<1x32xf32, #tpu.memory_space<vmem>>, %arg4: memref<16x32x512xbf16, #tpu.memory_space<vmem>>, %arg5: memref<1x512xf32, #tpu.memory_space<vmem>>, %arg6: memref<8x512xf32, #tpu.memory_space<vmem>>) attributes {dimension_semantics = [#tpu.dimension_semantics<parallel>], iteration_bounds = array<i64: 2>, scalar_prefetch = 0 : i64, scratch_operands = 0 : i64, tpu.core_type = #tpu.core_type<tc>, window_params = [{transform_indices = @transform_0, window_bounds = array<i64: 1, 4, 128, 162>}, {pipeline_mode = #tpu.pipeline_mode<synchronous>, transform_indices = @transform_1, window_bounds = array<i64: 162, 128>}, {pipeline_mode = #tpu.pipeline_mode<synchronous>, transform_indices = @transform_2, window_bounds = array<i64: 1, 32>}, {pipeline_mode = #tpu.pipeline_mode<synchronous>, transform_indices = @transform_3, window_bounds = array<i64: 16, 32, 512>}, {pipeline_mode = #tpu.pipeline_mode<synchronous>, transform_indices = @transform_4, window_bounds = array<i64: 1, 512>}, {transform_indices = @transform_5, window_bounds = array<i64: 8, 512>}]} {
    %c0 = arith.constant 0 : index
    %c0_0 = arith.constant 0 : index
    %0 = vector.load %arg2[%c0, %c0_0] : memref<162x128xbf16, #tpu.memory_space<vmem>>, vector<162x128xbf16>
    %c0_1 = arith.constant 0 : index
    %c0_2 = arith.constant 0 : index
    %c0_3 = arith.constant 0 : index
    %c0_4 = arith.constant 0 : index
    %1 = vector.load %arg1[%c0_1, %c0_2, %c0_3, %c0_4] : memref<1x4x128x162xbf16, #tpu.memory_space<vmem>>, vector<1x1x128x162xbf16>
    %2 = vector.shape_cast %1 : vector<1x1x128x162xbf16> to vector<128x162xbf16>
    %cst = arith.constant dense<0.000000e+00> : vector<128x128xf32>
    %3 = tpu.matmul %2, %0, %cst {dimension_numbers = #tpu.dot_dimension_numbers<[1], [0], [0], [1], [0, 0, 1, 1], [], []>} : vector<128x162xbf16>, vector<162x128xbf16>, vector<128x128xf32> -> vector<128x128xf32>
    %c0_5 = arith.constant 0 : index
    %c1 = arith.constant 1 : index
    %c0_6 = arith.constant 0 : index
    %c0_7 = arith.constant 0 : index
    %4 = vector.load %arg1[%c0_5, %c1, %c0_6, %c0_7] : memref<1x4x128x162xbf16, #tpu.memory_space<vmem>>, vector<1x1x128x162xbf16>
    %5 = vector.shape_cast %4 : vector<1x1x128x162xbf16> to vector<128x162xbf16>
    %cst_8 = arith.constant dense<0.000000e+00> : vector<128x128xf32>
    %6 = tpu.matmul %5, %0, %cst_8 {dimension_numbers = #tpu.dot_dimension_numbers<[1], [0], [0], [1], [0, 0, 1, 1], [], []>} : vector<128x162xbf16>, vector<162x128xbf16>, vector<128x128xf32> -> vector<128x128xf32>
    %7 = arith.maximumf %3, %6 : vector<128x128xf32>
    %c0_9 = arith.constant 0 : index
    %c2 = arith.constant 2 : index
    %c0_10 = arith.constant 0 : index
    %c0_11 = arith.constant 0 : index
    %8 = vector.load %arg1[%c0_9, %c2, %c0_10, %c0_11] : memref<1x4x128x162xbf16, #tpu.memory_space<vmem>>, vector<1x1x128x162xbf16>
    %9 = vector.shape_cast %8 : vector<1x1x128x162xbf16> to vector<128x162xbf16>
    %cst_12 = arith.constant dense<0.000000e+00> : vector<128x128xf32>
    %10 = tpu.matmul %9, %0, %cst_12 {dimension_numbers = #tpu.dot_dimension_numbers<[1], [0], [0], [1], [0, 0, 1, 1], [], []>} : vector<128x162xbf16>, vector<162x128xbf16>, vector<128x128xf32> -> vector<128x128xf32>
    %11 = arith.maximumf %7, %10 : vector<128x128xf32>
    %c0_13 = arith.constant 0 : index
    %c3 = arith.constant 3 : index
    %c0_14 = arith.constant 0 : index
    %c0_15 = arith.constant 0 : index
    %12 = vector.load %arg1[%c0_13, %c3, %c0_14, %c0_15] : memref<1x4x128x162xbf16, #tpu.memory_space<vmem>>, vector<1x1x128x162xbf16>
    %13 = vector.shape_cast %12 : vector<1x1x128x162xbf16> to vector<128x162xbf16>
    %cst_16 = arith.constant dense<0.000000e+00> : vector<128x128xf32>
    %14 = tpu.matmul %13, %0, %cst_16 {dimension_numbers = #tpu.dot_dimension_numbers<[1], [0], [0], [1], [0, 0, 1, 1], [], []>} : vector<128x162xbf16>, vector<162x128xbf16>, vector<128x128xf32> -> vector<128x128xf32>
    %15 = arith.maximumf %11, %14 : vector<128x128xf32>
    %16 = vector.extract_strided_slice %15 {offsets = [0, 0], sizes = [128, 32], strides = [1, 1]} : vector<128x128xf32> to vector<128x32xf32>
    %17 = vector.extract_strided_slice %15 {offsets = [0, 32], sizes = [128, 32], strides = [1, 1]} : vector<128x128xf32> to vector<128x32xf32>
    %18 = arith.maximumf %16, %17 : vector<128x32xf32>
    %19 = vector.extract_strided_slice %15 {offsets = [0, 64], sizes = [128, 32], strides = [1, 1]} : vector<128x128xf32> to vector<128x32xf32>
    %20 = vector.extract_strided_slice %15 {offsets = [0, 96], sizes = [128, 32], strides = [1, 1]} : vector<128x128xf32> to vector<128x32xf32>
    %21 = arith.maximumf %19, %20 : vector<128x32xf32>
    %22 = arith.maximumf %18, %21 : vector<128x32xf32>
    %c0_17 = arith.constant 0 : index
    %c0_18 = arith.constant 0 : index
    %23 = vector.load %arg3[%c0_17, %c0_18] : memref<1x32xf32, #tpu.memory_space<vmem>>, vector<1x32xf32>
    %24 = vector.broadcast %23 : vector<1x32xf32> to vector<128x32xf32>
    %25 = arith.addf %22, %24 : vector<128x32xf32>
    %cst_19 = arith.constant 0.000000e+00 : f32
    %26 = vector.broadcast %cst_19 : f32 to vector<128x32xf32>
    %27 = arith.maximumf %25, %26 : vector<128x32xf32>
    %cst_20 = arith.constant 0.000000e+00 : f32
    %28 = vector.broadcast %cst_20 : f32 to vector<8x512xf32>
    %29 = vector.extract_strided_slice %27 {offsets = [0, 0], sizes = [8, 32], strides = [1, 1]} : vector<128x32xf32> to vector<8x32xf32>
    %30 = arith.truncf %29 : vector<8x32xf32> to vector<8x32xbf16>
    %c0_21 = arith.constant 0 : index
    %c0_22 = arith.constant 0 : index
    %c0_23 = arith.constant 0 : index
    %31 = vector.load %arg4[%c0_21, %c0_22, %c0_23] : memref<16x32x512xbf16, #tpu.memory_space<vmem>>, vector<1x32x512xbf16>
    %32 = vector.shape_cast %31 : vector<1x32x512xbf16> to vector<32x512xbf16>
    %cst_24 = arith.constant dense<0.000000e+00> : vector<8x512xf32>
    %33 = tpu.matmul %30, %32, %cst_24 {dimension_numbers = #tpu.dot_dimension_numbers<[1], [0], [0], [1], [0, 0, 1, 1], [], []>} : vector<8x32xbf16>, vector<32x512xbf16>, vector<8x512xf32> -> vector<8x512xf32>
    %34 = arith.addf %28, %33 : vector<8x512xf32>
    %35 = vector.extract_strided_slice %27 {offsets = [8, 0], sizes = [8, 32], strides = [1, 1]} : vector<128x32xf32> to vector<8x32xf32>
    %36 = arith.truncf %35 : vector<8x32xf32> to vector<8x32xbf16>
    %c1_25 = arith.constant 1 : index
    %c0_26 = arith.constant 0 : index
    %c0_27 = arith.constant 0 : index
    %37 = vector.load %arg4[%c1_25, %c0_26, %c0_27] : memref<16x32x512xbf16, #tpu.memory_space<vmem>>, vector<1x32x512xbf16>
    %38 = vector.shape_cast %37 : vector<1x32x512xbf16> to vector<32x512xbf16>
    %cst_28 = arith.constant dense<0.000000e+00> : vector<8x512xf32>
    %39 = tpu.matmul %36, %38, %cst_28 {dimension_numbers = #tpu.dot_dimension_numbers<[1], [0], [0], [1], [0, 0, 1, 1], [], []>} : vector<8x32xbf16>, vector<32x512xbf16>, vector<8x512xf32> -> vector<8x512xf32>
    %40 = arith.addf %34, %39 : vector<8x512xf32>
    %41 = vector.extract_strided_slice %27 {offsets = [16, 0], sizes = [8, 32], strides = [1, 1]} : vector<128x32xf32> to vector<8x32xf32>
    %42 = arith.truncf %41 : vector<8x32xf32> to vector<8x32xbf16>
    %c2_29 = arith.constant 2 : index
    %c0_30 = arith.constant 0 : index
    %c0_31 = arith.constant 0 : index
    %43 = vector.load %arg4[%c2_29, %c0_30, %c0_31] : memref<16x32x512xbf16, #tpu.memory_space<vmem>>, vector<1x32x512xbf16>
    %44 = vector.shape_cast %43 : vector<1x32x512xbf16> to vector<32x512xbf16>
    %cst_32 = arith.constant dense<0.000000e+00> : vector<8x512xf32>
    %45 = tpu.matmul %42, %44, %cst_32 {dimension_numbers = #tpu.dot_dimension_numbers<[1], [0], [0], [1], [0, 0, 1, 1], [], []>} : vector<8x32xbf16>, vector<32x512xbf16>, vector<8x512xf32> -> vector<8x512xf32>
    %46 = arith.addf %40, %45 : vector<8x512xf32>
    %47 = vector.extract_strided_slice %27 {offsets = [24, 0], sizes = [8, 32], strides = [1, 1]} : vector<128x32xf32> to vector<8x32xf32>
    %48 = arith.truncf %47 : vector<8x32xf32> to vector<8x32xbf16>
    %c3_33 = arith.constant 3 : index
    %c0_34 = arith.constant 0 : index
    %c0_35 = arith.constant 0 : index
    %49 = vector.load %arg4[%c3_33, %c0_34, %c0_35] : memref<16x32x512xbf16, #tpu.memory_space<vmem>>, vector<1x32x512xbf16>
    %50 = vector.shape_cast %49 : vector<1x32x512xbf16> to vector<32x512xbf16>
    %cst_36 = arith.constant dense<0.000000e+00> : vector<8x512xf32>
    %51 = tpu.matmul %48, %50, %cst_36 {dimension_numbers = #tpu.dot_dimension_numbers<[1], [0], [0], [1], [0, 0, 1, 1], [], []>} : vector<8x32xbf16>, vector<32x512xbf16>, vector<8x512xf32> -> vector<8x512xf32>
    %52 = arith.addf %46, %51 : vector<8x512xf32>
    %53 = vector.extract_strided_slice %27 {offsets = [32, 0], sizes = [8, 32], strides = [1, 1]} : vector<128x32xf32> to vector<8x32xf32>
    %54 = arith.truncf %53 : vector<8x32xf32> to vector<8x32xbf16>
    %c4 = arith.constant 4 : index
    %c0_37 = arith.constant 0 : index
    %c0_38 = arith.constant 0 : index
    %55 = vector.load %arg4[%c4, %c0_37, %c0_38] : memref<16x32x512xbf16, #tpu.memory_space<vmem>>, vector<1x32x512xbf16>
    %56 = vector.shape_cast %55 : vector<1x32x512xbf16> to vector<32x512xbf16>
    %cst_39 = arith.constant dense<0.000000e+00> : vector<8x512xf32>
    %57 = tpu.matmul %54, %56, %cst_39 {dimension_numbers = #tpu.dot_dimension_numbers<[1], [0], [0], [1], [0, 0, 1, 1], [], []>} : vector<8x32xbf16>, vector<32x512xbf16>, vector<8x512xf32> -> vector<8x512xf32>
    %58 = arith.addf %52, %57 : vector<8x512xf32>
    %59 = vector.extract_strided_slice %27 {offsets = [40, 0], sizes = [8, 32], strides = [1, 1]} : vector<128x32xf32> to vector<8x32xf32>
    %60 = arith.truncf %59 : vector<8x32xf32> to vector<8x32xbf16>
    %c5 = arith.constant 5 : index
    %c0_40 = arith.constant 0 : index
    %c0_41 = arith.constant 0 : index
    %61 = vector.load %arg4[%c5, %c0_40, %c0_41] : memref<16x32x512xbf16, #tpu.memory_space<vmem>>, vector<1x32x512xbf16>
    %62 = vector.shape_cast %61 : vector<1x32x512xbf16> to vector<32x512xbf16>
    %cst_42 = arith.constant dense<0.000000e+00> : vector<8x512xf32>
    %63 = tpu.matmul %60, %62, %cst_42 {dimension_numbers = #tpu.dot_dimension_numbers<[1], [0], [0], [1], [0, 0, 1, 1], [], []>} : vector<8x32xbf16>, vector<32x512xbf16>, vector<8x512xf32> -> vector<8x512xf32>
    %64 = arith.addf %58, %63 : vector<8x512xf32>
    %65 = vector.extract_strided_slice %27 {offsets = [48, 0], sizes = [8, 32], strides = [1, 1]} : vector<128x32xf32> to vector<8x32xf32>
    %66 = arith.truncf %65 : vector<8x32xf32> to vector<8x32xbf16>
    %c6 = arith.constant 6 : index
    %c0_43 = arith.constant 0 : index
    %c0_44 = arith.constant 0 : index
    %67 = vector.load %arg4[%c6, %c0_43, %c0_44] : memref<16x32x512xbf16, #tpu.memory_space<vmem>>, vector<1x32x512xbf16>
    %68 = vector.shape_cast %67 : vector<1x32x512xbf16> to vector<32x512xbf16>
    %cst_45 = arith.constant dense<0.000000e+00> : vector<8x512xf32>
    %69 = tpu.matmul %66, %68, %cst_45 {dimension_numbers = #tpu.dot_dimension_numbers<[1], [0], [0], [1], [0, 0, 1, 1], [], []>} : vector<8x32xbf16>, vector<32x512xbf16>, vector<8x512xf32> -> vector<8x512xf32>
    %70 = arith.addf %64, %69 : vector<8x512xf32>
    %71 = vector.extract_strided_slice %27 {offsets = [56, 0], sizes = [8, 32], strides = [1, 1]} : vector<128x32xf32> to vector<8x32xf32>
    %72 = arith.truncf %71 : vector<8x32xf32> to vector<8x32xbf16>
    %c7 = arith.constant 7 : index
    %c0_46 = arith.constant 0 : index
    %c0_47 = arith.constant 0 : index
    %73 = vector.load %arg4[%c7, %c0_46, %c0_47] : memref<16x32x512xbf16, #tpu.memory_space<vmem>>, vector<1x32x512xbf16>
    %74 = vector.shape_cast %73 : vector<1x32x512xbf16> to vector<32x512xbf16>
    %cst_48 = arith.constant dense<0.000000e+00> : vector<8x512xf32>
    %75 = tpu.matmul %72, %74, %cst_48 {dimension_numbers = #tpu.dot_dimension_numbers<[1], [0], [0], [1], [0, 0, 1, 1], [], []>} : vector<8x32xbf16>, vector<32x512xbf16>, vector<8x512xf32> -> vector<8x512xf32>
    %76 = arith.addf %70, %75 : vector<8x512xf32>
    %77 = vector.extract_strided_slice %27 {offsets = [64, 0], sizes = [8, 32], strides = [1, 1]} : vector<128x32xf32> to vector<8x32xf32>
    %78 = arith.truncf %77 : vector<8x32xf32> to vector<8x32xbf16>
    %c8 = arith.constant 8 : index
    %c0_49 = arith.constant 0 : index
    %c0_50 = arith.constant 0 : index
    %79 = vector.load %arg4[%c8, %c0_49, %c0_50] : memref<16x32x512xbf16, #tpu.memory_space<vmem>>, vector<1x32x512xbf16>
    %80 = vector.shape_cast %79 : vector<1x32x512xbf16> to vector<32x512xbf16>
    %cst_51 = arith.constant dense<0.000000e+00> : vector<8x512xf32>
    %81 = tpu.matmul %78, %80, %cst_51 {dimension_numbers = #tpu.dot_dimension_numbers<[1], [0], [0], [1], [0, 0, 1, 1], [], []>} : vector<8x32xbf16>, vector<32x512xbf16>, vector<8x512xf32> -> vector<8x512xf32>
    %82 = arith.addf %76, %81 : vector<8x512xf32>
    %83 = vector.extract_strided_slice %27 {offsets = [72, 0], sizes = [8, 32], strides = [1, 1]} : vector<128x32xf32> to vector<8x32xf32>
    %84 = arith.truncf %83 : vector<8x32xf32> to vector<8x32xbf16>
    %c9 = arith.constant 9 : index
    %c0_52 = arith.constant 0 : index
    %c0_53 = arith.constant 0 : index
    %85 = vector.load %arg4[%c9, %c0_52, %c0_53] : memref<16x32x512xbf16, #tpu.memory_space<vmem>>, vector<1x32x512xbf16>
    %86 = vector.shape_cast %85 : vector<1x32x512xbf16> to vector<32x512xbf16>
    %cst_54 = arith.constant dense<0.000000e+00> : vector<8x512xf32>
    %87 = tpu.matmul %84, %86, %cst_54 {dimension_numbers = #tpu.dot_dimension_numbers<[1], [0], [0], [1], [0, 0, 1, 1], [], []>} : vector<8x32xbf16>, vector<32x512xbf16>, vector<8x512xf32> -> vector<8x512xf32>
    %88 = arith.addf %82, %87 : vector<8x512xf32>
    %89 = vector.extract_strided_slice %27 {offsets = [80, 0], sizes = [8, 32], strides = [1, 1]} : vector<128x32xf32> to vector<8x32xf32>
    %90 = arith.truncf %89 : vector<8x32xf32> to vector<8x32xbf16>
    %c10 = arith.constant 10 : index
    %c0_55 = arith.constant 0 : index
    %c0_56 = arith.constant 0 : index
    %91 = vector.load %arg4[%c10, %c0_55, %c0_56] : memref<16x32x512xbf16, #tpu.memory_space<vmem>>, vector<1x32x512xbf16>
    %92 = vector.shape_cast %91 : vector<1x32x512xbf16> to vector<32x512xbf16>
    %cst_57 = arith.constant dense<0.000000e+00> : vector<8x512xf32>
    %93 = tpu.matmul %90, %92, %cst_57 {dimension_numbers = #tpu.dot_dimension_numbers<[1], [0], [0], [1], [0, 0, 1, 1], [], []>} : vector<8x32xbf16>, vector<32x512xbf16>, vector<8x512xf32> -> vector<8x512xf32>
    %94 = arith.addf %88, %93 : vector<8x512xf32>
    %95 = vector.extract_strided_slice %27 {offsets = [88, 0], sizes = [8, 32], strides = [1, 1]} : vector<128x32xf32> to vector<8x32xf32>
    %96 = arith.truncf %95 : vector<8x32xf32> to vector<8x32xbf16>
    %c11 = arith.constant 11 : index
    %c0_58 = arith.constant 0 : index
    %c0_59 = arith.constant 0 : index
    %97 = vector.load %arg4[%c11, %c0_58, %c0_59] : memref<16x32x512xbf16, #tpu.memory_space<vmem>>, vector<1x32x512xbf16>
    %98 = vector.shape_cast %97 : vector<1x32x512xbf16> to vector<32x512xbf16>
    %cst_60 = arith.constant dense<0.000000e+00> : vector<8x512xf32>
    %99 = tpu.matmul %96, %98, %cst_60 {dimension_numbers = #tpu.dot_dimension_numbers<[1], [0], [0], [1], [0, 0, 1, 1], [], []>} : vector<8x32xbf16>, vector<32x512xbf16>, vector<8x512xf32> -> vector<8x512xf32>
    %100 = arith.addf %94, %99 : vector<8x512xf32>
    %101 = vector.extract_strided_slice %27 {offsets = [96, 0], sizes = [8, 32], strides = [1, 1]} : vector<128x32xf32> to vector<8x32xf32>
    %102 = arith.truncf %101 : vector<8x32xf32> to vector<8x32xbf16>
    %c12 = arith.constant 12 : index
    %c0_61 = arith.constant 0 : index
    %c0_62 = arith.constant 0 : index
    %103 = vector.load %arg4[%c12, %c0_61, %c0_62] : memref<16x32x512xbf16, #tpu.memory_space<vmem>>, vector<1x32x512xbf16>
    %104 = vector.shape_cast %103 : vector<1x32x512xbf16> to vector<32x512xbf16>
    %cst_63 = arith.constant dense<0.000000e+00> : vector<8x512xf32>
    %105 = tpu.matmul %102, %104, %cst_63 {dimension_numbers = #tpu.dot_dimension_numbers<[1], [0], [0], [1], [0, 0, 1, 1], [], []>} : vector<8x32xbf16>, vector<32x512xbf16>, vector<8x512xf32> -> vector<8x512xf32>
    %106 = arith.addf %100, %105 : vector<8x512xf32>
    %107 = vector.extract_strided_slice %27 {offsets = [104, 0], sizes = [8, 32], strides = [1, 1]} : vector<128x32xf32> to vector<8x32xf32>
    %108 = arith.truncf %107 : vector<8x32xf32> to vector<8x32xbf16>
    %c13 = arith.constant 13 : index
    %c0_64 = arith.constant 0 : index
    %c0_65 = arith.constant 0 : index
    %109 = vector.load %arg4[%c13, %c0_64, %c0_65] : memref<16x32x512xbf16, #tpu.memory_space<vmem>>, vector<1x32x512xbf16>
    %110 = vector.shape_cast %109 : vector<1x32x512xbf16> to vector<32x512xbf16>
    %cst_66 = arith.constant dense<0.000000e+00> : vector<8x512xf32>
    %111 = tpu.matmul %108, %110, %cst_66 {dimension_numbers = #tpu.dot_dimension_numbers<[1], [0], [0], [1], [0, 0, 1, 1], [], []>} : vector<8x32xbf16>, vector<32x512xbf16>, vector<8x512xf32> -> vector<8x512xf32>
    %112 = arith.addf %106, %111 : vector<8x512xf32>
    %113 = vector.extract_strided_slice %27 {offsets = [112, 0], sizes = [8, 32], strides = [1, 1]} : vector<128x32xf32> to vector<8x32xf32>
    %114 = arith.truncf %113 : vector<8x32xf32> to vector<8x32xbf16>
    %c14 = arith.constant 14 : index
    %c0_67 = arith.constant 0 : index
    %c0_68 = arith.constant 0 : index
    %115 = vector.load %arg4[%c14, %c0_67, %c0_68] : memref<16x32x512xbf16, #tpu.memory_space<vmem>>, vector<1x32x512xbf16>
    %116 = vector.shape_cast %115 : vector<1x32x512xbf16> to vector<32x512xbf16>
    %cst_69 = arith.constant dense<0.000000e+00> : vector<8x512xf32>
    %117 = tpu.matmul %114, %116, %cst_69 {dimension_numbers = #tpu.dot_dimension_numbers<[1], [0], [0], [1], [0, 0, 1, 1], [], []>} : vector<8x32xbf16>, vector<32x512xbf16>, vector<8x512xf32> -> vector<8x512xf32>
    %118 = arith.addf %112, %117 : vector<8x512xf32>
    %119 = vector.extract_strided_slice %27 {offsets = [120, 0], sizes = [8, 32], strides = [1, 1]} : vector<128x32xf32> to vector<8x32xf32>
    %120 = arith.truncf %119 : vector<8x32xf32> to vector<8x32xbf16>
    %c15 = arith.constant 15 : index
    %c0_70 = arith.constant 0 : index
    %c0_71 = arith.constant 0 : index
    %121 = vector.load %arg4[%c15, %c0_70, %c0_71] : memref<16x32x512xbf16, #tpu.memory_space<vmem>>, vector<1x32x512xbf16>
    %122 = vector.shape_cast %121 : vector<1x32x512xbf16> to vector<32x512xbf16>
    %cst_72 = arith.constant dense<0.000000e+00> : vector<8x512xf32>
    %123 = tpu.matmul %120, %122, %cst_72 {dimension_numbers = #tpu.dot_dimension_numbers<[1], [0], [0], [1], [0, 0, 1, 1], [], []>} : vector<8x32xbf16>, vector<32x512xbf16>, vector<8x512xf32> -> vector<8x512xf32>
    %124 = arith.addf %118, %123 : vector<8x512xf32>
    %c0_73 = arith.constant 0 : index
    %c0_74 = arith.constant 0 : index
    %125 = vector.load %arg5[%c0_73, %c0_74] : memref<1x512xf32, #tpu.memory_space<vmem>>, vector<1x512xf32>
    %126 = vector.broadcast %125 : vector<1x512xf32> to vector<8x512xf32>
    %127 = arith.addf %124, %126 : vector<8x512xf32>
    %c0_75 = arith.constant 0 : index
    %c0_76 = arith.constant 0 : index
    %128 = vector.load %arg6[%c0_75, %c0_76] : memref<8x512xf32, #tpu.memory_space<vmem>>, vector<8x512xf32>
    tpu.vector_store %arg6[%c0_75, %c0_76], %127 {strides = array<i32>} : memref<8x512xf32, #tpu.memory_space<vmem>>, vector<8x512xf32>,
    return
  }
  func.func @transform_0(%arg0: i32) -> (i32, i32, i32, i32) {
    %c0_i32 = arith.constant 0 : i32
    %c0_i32_0 = arith.constant 0 : i32
    %c0_i32_1 = arith.constant 0 : i32
    %c0_i32_2 = arith.constant 0 : i32
    return %arg0, %c0_i32, %c0_i32_0, %c0_i32_1 : i32, i32, i32, i32
  }
  func.func @transform_1(%arg0: i32) -> (i32, i32) {
    %c0_i32 = arith.constant 0 : i32
    %c0_i32_0 = arith.constant 0 : i32
    %c0_i32_1 = arith.constant 0 : i32
    return %c0_i32, %c0_i32_0 : i32, i32
  }
  func.func @transform_2(%arg0: i32) -> (i32, i32) {
    %c0_i32 = arith.constant 0 : i32
    %c0_i32_0 = arith.constant 0 : i32
    %c0_i32_1 = arith.constant 0 : i32
    return %c0_i32, %c0_i32_0 : i32, i32
  }
  func.func @transform_3(%arg0: i32) -> (i32, i32, i32) {
    %c0_i32 = arith.constant 0 : i32
    %c0_i32_0 = arith.constant 0 : i32
    %c0_i32_1 = arith.constant 0 : i32
    %c0_i32_2 = arith.constant 0 : i32
    return %c0_i32, %c0_i32_0, %c0_i32_1 : i32, i32, i32
  }
  func.func @transform_4(%arg0: i32) -> (i32, i32) {
    %c0_i32 = arith.constant 0 : i32
    %c0_i32_0 = arith.constant 0 : i32
    %c0_i32_1 = arith.constant 0 : i32
    return %c0_i32, %c0_i32_0 : i32, i32
  }
  func.func @transform_5(%arg0: i32) -> (i32, i32) {
    %c0_i32 = arith.constant 0 : i32
    %c0_i32_0 = arith.constant 0 : i32
    return %arg0, %c0_i32 : i32, i32
  }
}

</mosaic_0001>

<bundles_post_ra>
// kernel: video_conv_forward.1
= control target key start
LH: loop header
LB: loop body
LE: loop exit
PB: predicated region body
PF: predicated region fallthrough
CT: control target
= control target key end

     0   :  { %10 = vsyncpa [#allocation3], 0  ;;  %s5713_s0 = inlined_call_operand.vmem [shape: bf16[2,4,128,162], index: 0, kind: input, shape index: {}]   ;;  %s5714_s1 = inlined_call_operand.vmem [shape: bf16[162,128], index: 1, kind: input, shape index: {}]   ;;  %s5715_s2 = inlined_call_operand.vmem [shape: f32[1,32], index: 2, kind: input, shape index: {}]   ;;  %s5716_s3 = inlined_call_operand.vmem [shape: bf16[16,32,512], index: 3, kind: input, shape index: {}]   ;;  %s5717_s4 = inlined_call_operand.vmem [shape: f32[1,512], index: 4, kind: input, shape index: {}]   ;;  %s5718_s5 = inlined_call_operand.hbm [shape: f32[16,512], index: 5, kind: output, shape index: {}]  }
   0x1   :  { %12 = vsyncpa [#allocation3 + $0x1], 0  ;;  %s4608_s18 = smov 0   ;;  %s4610_s19 = smov 0  }
   0x2   :  { %s4612_s20 = smov 0   ;;  %s4614_s21 = smov 0  }
   0x3 LB: > { %s4629_s22 = sadd.s32 4294967295, %s4572_s21   ;;  %s3719_s23 = sadd.s32 4294967294, %s4572_s21   ;;  %s4572_s21 = sphi %s4614_s21, %s5724_s21   ;;  %s4568_s20 = sphi %s4612_s20, %s5723_s20   ;;  %s4564_s19 = sphi %s4610_s19, %s5722_s19   ;;  %s4560_s18 = sphi %s4608_s18, %s5721_s18  }
   0x4   : > { %s4633_s24 = sadd.s32 1, %s4572_s21   ;;  %s135_s25 = sadd.s32 1, %s4568_s20 }
   0x5   : > { %s132_s26 = ssub.s32 %s4572_s21, %s4633_s24  ;;  %p145_p0 = scmp.ne.s32.totalorder %s4568_s20, %s4564_s19 }
   0x6   : > { %p133_p1 = scmp.eq.s32.totalorder %s132_s26, 0  ;;  %p146_p2 = scmp.eq.s32.totalorder %s4629_s22, 1 }
   0x7   : > { %p151_p3 = scmp.ne.s32.totalorder %s4564_s19, %s4560_s18  ;;  %p152_p4 = scmp.eq.s32.totalorder %s3719_s23, 1 }
   0x8   : > { %s4644_s27 = scalar_select %p133_p1, %s4568_s20, %s135_s25  }
   0x9   : > { %p4646_p5 = por %p146_p2, %p145_p0  ;;  %p4650_p6 = por %p152_p4, %p151_p3 }
   0xa   : > { %p3722_p7 = scmp.ge.s32.totalorder %s4572_s21, 1  ;;  %p190_p8 = scmp.lt.s32.totalorder %s4572_s21, 3 }
   0xc   : > { %p191_p9 = pnand %p3722_p7, %p190_p8 }
   0xd   : > { %v4659_v0 = vld [vmem:[%s5714_s1] sm:$0xff] (!%p191_p9)   ;;  %v4574_v1 = vmov (!%p191_p9), 0   ;;  %v4668_v2 = vld [vmem:[%s5714_s1 + $0x8] sm:$0xff] (!%p191_p9)   ;;  %p218_p10 = scmp.lt.s32.totalorder (!%p191_p9), %s4629_s22, 1  ;;  %v4679_v3 = vld [vmem:[%s5714_s1 + $0x10] sm:$0xff] (!%p191_p9)   ;;  %vm396_vm0 = vcmask (!%p191_p9), 277504  }
   0xe   : > { %194 = sbr.rel (%p191_p9) target bundleno = 931 (0x3a3), region = 40  ;;  %425 = vmatprep.subr.bf16.mxu0 (!%p191_p9), %v4574_v1  ;;  %635 = vmatprep.subr.bf16.mxu1 (!%p191_p9), %v4574_v1  ;;  %v4693_v4 = vld [vmem:[%s5714_s1 + $0x18] sm:$0xff] (!%p191_p9)   ;;  %v4705_v7 = vld [vmem:[%s5714_s1 + $0x20] sm:$0xff] (!%p191_p9)   ;;  %v4715_v8 = vld [vmem:[%s5714_s1 + $0x28] sm:$0xff] (!%p191_p9)   ;;  %vm421_vm1 = vcmask (!%p191_p9), 1040384   ;;  %s4576_s6 = smov (!%p191_p9), 64  }
   0xf   : > { %426 = vmatpush1.bf16.msra.mxu0 (!%p191_p9), %v4659_v0  ;;  %636 = vmatpush1.bf16.msra.mxu1 (!%p191_p9), %v4659_v0  ;;  %v4724_v9 = vld [vmem:[%s5714_s1 + $0x30] sm:$0xff] (!%p191_p9)   ;;  %v4733_v10 = vld [vmem:[%s5714_s1 + $0x38] sm:$0xff] (!%p191_p9)   ;;  %v4742_v11 = vld [vmem:[%s5714_s1 + $0x40] sm:$0xff] (!%p191_p9)   ;;  %vm1458_vm2 = vcmask (!%p191_p9), 261120   ;;  %s215_s30 = sand.u32 (!%p191_p9), 1, %s4564_s19   ;;  %s4168_s8 = sshll.u32 (!%p191_p9), %s4629_s22, 9 }
  0x10   : > { %427 = vmatprep.subr.bf16.mxu0 (!%p191_p9), %v4574_v1  ;;  %637 = vmatprep.subr.bf16.mxu1 (!%p191_p9), %v4574_v1  ;;  %v4751_v12 = vld [vmem:[%s5714_s1 + $0x48] sm:$0xff] (!%p191_p9)   ;;  %v4221_v13 = vld [vmem:[%s5714_s1 + $0x50] ss:$0 sps:$4 sm:$0x11] (!%p191_p9)   ;;  %s5669_s13 = scalar_lea.hbm (!%p191_p9), %s5718_s5, %s4168_s8  ;;  %s4577_s16 = smov (!%p191_p9), [#allocation2]  }
  0x11   : > { %v4762_v14 = vsel (!%p191_p9), %vm421_vm1, %v4221_v13, 0  ;;  %s4514_s17 = sshll.u32 (!%p191_p9), %s4577_s16, 4  ;;  %s4515_s17 = int_to_ptr.vmem [resolvable:$false] %s4514_s17 }
  0x12   : > { %s4516_s23 = scalar_lea.vmem (!%p191_p9), %s4515_s17, 1024 }
  0x13   : > { %428 = vmatpush1.bf16.msra.mxu0 (!%p191_p9), %v4668_v2  ;;  %638 = vmatpush1.bf16.msra.mxu1 (!%p191_p9), %v4668_v2 }
  0x14   : > { %429 = vmatprep.subr.bf16.mxu0 (!%p191_p9), %v4574_v1  ;;  %639 = vmatprep.subr.bf16.mxu1 (!%p191_p9), %v4574_v1 }
  0x15   : > { %s219_s9 = scalar_select %p218_p10, %s4629_s22, 1 }
  0x16   : > { %s3646_s22 = scalar_lea.sflag [#allocation3], %s215_s30 }
  0x17   : > { %s4167_s12 = sshll.u32 %s219_s9, 9  ;;  %430 = vmatpush1.bf16.msra.mxu0 %v4679_v3  ;;  %640 = vmatpush1.bf16.msra.mxu1 %v4679_v3 }
  0x18   : > { %s4686_s15 = scalar_lea.vmem %s5713_s0, %s4167_s12  ;;  %431 = vmatprep.subr.bf16.mxu0 %v4574_v1  ;;  %641 = vmatprep.subr.bf16.mxu1 %v4574_v1 }
  0x19   : > { %v4224_v5 = vld [vmem:[%s4686_s15 + $0x4] ss:$8 sps:$4 sm:$0xff]   ;;  %v4222_v15 = vld [vmem:[%s4686_s15] ss:$8 sps:$4 sm:$0xff]   ;;  %v4228_v17 = vld [vmem:[%s4686_s15 + $0x14] ss:$8 sps:$4 sm:$0xff]  }
  0x1a   : > { %3753 = vmatprep.mubr.msk.bf16.mxu0 %vm396_vm0, %v4224_v5  ;;  %v4227_v6 = vld [vmem:[%s4686_s15 + $0x84] ss:$8 sps:$4 sm:$0xff]   ;;  %v4225_v16 = vld [vmem:[%s4686_s15 + $0x80] ss:$8 sps:$4 sm:$0xff]   ;;  %v4230_v18 = vld [vmem:[%s4686_s15 + $0x94] ss:$8 sps:$4 sm:$0xff]  }
  0x1b   : > { %432 = vmatpush1.bf16.msra.mxu0 %v4693_v4  ;;  %642 = vmatpush1.bf16.msra.mxu1 %v4693_v4  ;;  %v4232_v19 = vld [vmem:[%s4686_s15 + $0x10] ss:$8 sps:$4 sm:$0xff]   ;;  %v4234_v21 = vld [vmem:[%s4686_s15 + $0x24] ss:$8 sps:$4 sm:$0xff]   ;;  %v4238_v23 = vld [vmem:[%s4686_s15 + $0x20] ss:$8 sps:$4 sm:$0xff]  }
  0x1c   : > { %433 = vmatprep.subr.bf16.mxu0 %v4574_v1  ;;  %643 = vmatprep.subr.bf16.mxu1 %v4574_v1  ;;  %v4233_v20 = vld [vmem:[%s4686_s15 + $0x90] ss:$8 sps:$4 sm:$0xff]   ;;  %v4236_v22 = vld [vmem:[%s4686_s15 + $0xa4] ss:$8 sps:$4 sm:$0xff]   ;;  %v4239_v24 = vld [vmem:[%s4686_s15 + $0xa0] ss:$8 sps:$4 sm:$0xff]  }
  0x1d   : > { %3793 = vmatprep.mubr.msk.bf16.mxu1 %vm396_vm0, %v4227_v6  ;;  %v4240_v25 = vld [vmem:[%s4686_s15 + $0x34] ss:$8 sps:$4 sm:$0xff]   ;;  %v4244_v27 = vld [vmem:[%s4686_s15 + $0x30] ss:$8 sps:$4 sm:$0xff]   ;;  %v4246_v29 = vld [vmem:[%s4686_s15 + $0x44] ss:$8 sps:$4 sm:$0xff]  }
  0x1e   : > { %v4242_v26 = vld [vmem:[%s4686_s15 + $0xb4] ss:$8 sps:$4 sm:$0xff]   ;;  %v4245_v28 = vld [vmem:[%s4686_s15 + $0xb0] ss:$8 sps:$4 sm:$0xff]   ;;  %v4248_v30 = vld [vmem:[%s4686_s15 + $0xc4] ss:$8 sps:$4 sm:$0xff]  }
  0x1f   : > { %434 = vmatpush1.bf16.msra.mxu0 %v4705_v7  ;;  %644 = vmatpush1.bf16.msra.mxu1 %v4705_v7  ;;  %v4250_v31 = vld [vmem:[%s4686_s15 + $0x40] ss:$8 sps:$4 sm:$0xff]   ;;  %v4252_v33 = vld [vmem:[%s4686_s15 + $0x54] ss:$8 sps:$4 sm:$0xff]   ;;  %v4256_v35 = vld [vmem:[%s4686_s15 + $0x50] ss:$8 sps:$4 sm:$0xff]  }
  0x20   : > { %435 = vmatprep.subr.bf16.mxu0 %v4574_v1  ;;  %645 = vmatprep.subr.bf16.mxu1 %v4574_v1  ;;  %v4251_v32 = vld [vmem:[%s4686_s15 + $0xc0] ss:$8 sps:$4 sm:$0xff]   ;;  %v4254_v34 = vld [vmem:[%s4686_s15 + $0xd4] ss:$8 sps:$4 sm:$0xff]   ;;  %v4257_v36 = vld [vmem:[%s4686_s15 + $0xd0] ss:$8 sps:$4 sm:$0xff]  }
  0x21   : > { %v4258_v37 = vld [vmem:[%s4686_s15 + $0x64] ss:$8 sps:$4 sm:$0xff]   ;;  %v4262_v39 = vld [vmem:[%s4686_s15 + $0x60] ss:$8 sps:$4 sm:$0xff]   ;;  %v4264_v41 = vld [vmem:[%s4686_s15 + $0x74] ss:$8 sps:$4 sm:$0xff]  }
  0x22   : > { %v4260_v38 = vld [vmem:[%s4686_s15 + $0xe4] ss:$8 sps:$4 sm:$0xff]   ;;  %v4263_v40 = vld [vmem:[%s4686_s15 + $0xe0] ss:$8 sps:$4 sm:$0xff]   ;;  %v4266_v42 = vld [vmem:[%s4686_s15 + $0xf4] ss:$8 sps:$4 sm:$0xff]  }
  0x23   : > { %436 = vmatpush1.bf16.msra.mxu0 %v4715_v8  ;;  %646 = vmatpush1.bf16.msra.mxu1 %v4715_v8  ;;  %v4268_v43 = vld [vmem:[%s4686_s15 + $0x70] ss:$8 sps:$4 sm:$0xff]   ;;  %v4272_v45 = vld [vmem:[%s4686_s15 + $0x104] ss:$8 sps:$4 sm:$0xff]   ;;  %v4270_v47 = vld [vmem:[%s4686_s15 + $0x100] ss:$8 sps:$4 sm:$0xff]  }
  0x24   : > { %437 = vmatprep.subr.bf16.mxu0 %v4574_v1  ;;  %647 = vmatprep.subr.bf16.mxu1 %v4574_v1  ;;  %v4269_v44 = vld [vmem:[%s4686_s15 + $0xf0] ss:$8 sps:$4 sm:$0xff]   ;;  %v4275_v46 = vld [vmem:[%s4686_s15 + $0x184] ss:$8 sps:$4 sm:$0xff]   ;;  %v4273_v48 = vld [vmem:[%s4686_s15 + $0x180] ss:$8 sps:$4 sm:$0xff]  }
  0x25   : > { %v4276_v49 = vld [vmem:[%s4686_s15 + $0x114] ss:$8 sps:$4 sm:$0xff]   ;;  %v4278_v51 = vld [vmem:[%s4686_s15 + $0x110] ss:$8 sps:$4 sm:$0xff]   ;;  %v4282_v53 = vld [vmem:[%s4686_s15 + $0x124] ss:$8 sps:$4 sm:$0xff]  }
  0x26   : > { %v4279_v50 = vld [vmem:[%s4686_s15 + $0x194] ss:$8 sps:$4 sm:$0xff]   ;;  %v4281_v52 = vld [vmem:[%s4686_s15 + $0x190] ss:$8 sps:$4 sm:$0xff]   ;;  %v4285_v54 = vld [vmem:[%s4686_s15 + $0x1a4] ss:$8 sps:$4 sm:$0xff]  }
  0x27   : > { %438 = vmatpush1.bf16.msra.mxu0 %v4724_v9  ;;  %648 = vmatpush1.bf16.msra.mxu1 %v4724_v9  ;;  %v4284_v55 = vld [vmem:[%s4686_s15 + $0x120] ss:$8 sps:$4 sm:$0xff]   ;;  %v4288_v57 = vld [vmem:[%s4686_s15 + $0x134] ss:$8 sps:$4 sm:$0xff]   ;;  %v4290_v59 = vld [vmem:[%s4686_s15 + $0x130] ss:$8 sps:$4 sm:$0xff]  }
  0x28   : > { %439 = vmatprep.subr.bf16.mxu0 %v4574_v1  ;;  %649 = vmatprep.subr.bf16.mxu1 %v4574_v1  ;;  %v4287_v56 = vld [vmem:[%s4686_s15 + $0x1a0] ss:$8 sps:$4 sm:$0xff]   ;;  %v4291_v58 = vld [vmem:[%s4686_s15 + $0x1b4] ss:$8 sps:$4 sm:$0xff]   ;;  %v4293_v60 = vld [vmem:[%s4686_s15 + $0x1b0] ss:$8 sps:$4 sm:$0xff]  }
  0x29   : > { %v4294_v61 = vld [vmem:[%s4686_s15 + $0x144] ss:$8 sps:$4 sm:$0xff]   ;;  %v4296_v63 = vld [vmem:[%s4686_s15 + $0x140] ss:$8 sps:$4 sm:$0xff]   ;;  %v4305_v5 = vld [vmem:[%s4686_s15 + $0x1d0] ss:$8 sps:$4 sm:$0xff]  }
  0x2a   : > { %v4297_v62 = vld [vmem:[%s4686_s15 + $0x1c4] ss:$8 sps:$4 sm:$0xff]   ;;  %v4317_v13 = vld [vmem:[%s4686_s15 + $0x1f0] ss:$8 sps:$4 sm:$0xff]  }
  0x2b   : > { %440 = vmatpush1.bf16.msra.mxu0 %v4733_v10  ;;  %650 = vmatpush1.bf16.msra.mxu1 %v4733_v10  ;;  %v4306_v6 = vld [vmem:[%s4686_s15 + $0x164] ss:$8 sps:$4 sm:$0xff]  }
  0x2c   : > { %441 = vmatprep.subr.bf16.mxu0 %v4574_v1  ;;  %651 = vmatprep.subr.bf16.mxu1 %v4574_v1 }
  0x2f   : > { %442 = vmatpush1.bf16.msra.mxu0 %v4742_v11  ;;  %652 = vmatpush1.bf16.msra.mxu1 %v4742_v11 }
  0x30   : > { %443 = vmatprep.subr.bf16.mxu0 %v4574_v1  ;;  %653 = vmatprep.subr.bf16.mxu1 %v4574_v1 }
  0x33   : > { %444 = vmatpush1.bf16.msra.mxu0 %v4751_v12  ;;  %654 = vmatpush1.bf16.msra.mxu1 %v4751_v12 }
  0x34   : > { %445 = vmatprep.subr.bf16.mxu0 %v4574_v1  ;;  %655 = vmatprep.subr.bf16.mxu1 %v4574_v1 }
  0x37   : > { %446 = vmatpush1.bf16.msra.mxu0 %v4762_v14  ;;  %656 = vmatpush1.bf16.msra.mxu1 %v4762_v14 }
  0x38   : > { %861 = vmatprep.subr.bf16.mxu0 %v4574_v1  ;;  %1087 = vmatprep.subr.bf16.mxu1 %v4574_v1 }
  0x3a   : > { %458 = vmatmul.mubr.bf16.vlgmr.msra.gmra.mrb[0].mxu0 %v4222_v15  ;;  %668 = vmatmul.mubr.bf16.vlgmr.msra.gmra.mrb[0].mxu1 %v4225_v16 }
  0x3b   : > { %862 = vmatpush1.bf16.msra.mxu0 %v4659_v0  ;;  %1088 = vmatpush1.bf16.msra.mxu1 %v4659_v0  ;;  %v4299_v0 = vld [vmem:[%s4686_s15 + $0x1c0] ss:$8 sps:$4 sm:$0xff]  }
  0x3c   : > { %863 = vmatprep.subr.bf16.mxu0 %v4574_v1  ;;  %3754 = vmatprep.mubr.msk.bf16.mxu0 %vm396_vm0, %v4228_v17 }
  0x3d   : > { %3794 = vmatprep.mubr.msk.bf16.mxu1 %vm396_vm0, %v4230_v18  ;;  %1089 = vmatprep.subr.bf16.mxu1 %v4574_v1 }
  0x3f   : > { %864 = vmatpush1.bf16.msra.mxu0 %v4668_v2  ;;  %1090 = vmatpush1.bf16.msra.mxu1 %v4668_v2  ;;  %v4300_v2 = vld [vmem:[%s4686_s15 + $0x154] ss:$8 sps:$4 sm:$0xff]  }
  0x40   : > { %865 = vmatprep.subr.bf16.mxu0 %v4574_v1  ;;  %1091 = vmatprep.subr.bf16.mxu1 %v4574_v1 }
  0x42   : > { %466 = vmatmul.mubr.bf16.gmra.mrb[4].mxu0 %v4232_v19  ;;  %676 = vmatmul.mubr.bf16.gmra.mrb[4].mxu1 %v4233_v20 }
  0x43   : > { %866 = vmatpush1.bf16.msra.mxu0 %v4679_v3  ;;  %3755 = vmatprep.mubr.msk.bf16.mxu0 %vm396_vm0, %v4234_v21 }
  0x44   : > { %3795 = vmatprep.mubr.msk.bf16.mxu1 %vm396_vm0, %v4236_v22  ;;  %1092 = vmatpush1.bf16.msra.mxu1 %v4679_v3  ;;  %v4303_v3 = vld [vmem:[%s4686_s15 + $0x1d4] ss:$8 sps:$4 sm:$0xff]  }
  0x45   : > { %867 = vmatprep.subr.bf16.mxu0 %v4574_v1  ;;  %1093 = vmatprep.subr.bf16.mxu1 %v4574_v1 }
  0x47   : > { %868 = vmatpush1.bf16.msra.mxu0 %v4693_v4 }
  0x48   : > { %1094 = vmatpush1.bf16.msra.mxu1 %v4693_v4  ;;  %869 = vmatprep.subr.bf16.mxu0 %v4574_v1  ;;  %v4302_v4 = vld [vmem:[%s4686_s15 + $0x150] ss:$8 sps:$4 sm:$0xff]  }
  0x49   : > { %1095 = vmatprep.subr.bf16.mxu1 %v4574_v1 }
  0x4a   : > { %474 = vmatmul.mubr.bf16.gmra.mrb[8].mxu0 %v4238_v23  ;;  %684 = vmatmul.mubr.bf16.gmra.mrb[8].mxu1 %v4239_v24 }
  0x4b   : > { %3756 = vmatprep.mubr.msk.bf16.mxu0 %vm396_vm0, %v4240_v25  ;;  %3796 = vmatprep.mubr.msk.bf16.mxu1 %vm396_vm0, %v4242_v26 }
  0x4c   : > { %870 = vmatpush1.bf16.msra.mxu0 %v4705_v7  ;;  %1096 = vmatpush1.bf16.msra.mxu1 %v4705_v7  ;;  %v4309_v7 = vld [vmem:[%s4686_s15 + $0x1e4] ss:$8 sps:$4 sm:$0xff]  }
  0x4d   : > { %871 = vmatprep.subr.bf16.mxu0 %v4574_v1  ;;  %1097 = vmatprep.subr.bf16.mxu1 %v4574_v1 }
  0x50   : > { %872 = vmatpush1.bf16.msra.mxu0 %v4715_v8  ;;  %1098 = vmatpush1.bf16.msra.mxu1 %v4715_v8  ;;  %v4308_v8 = vld [vmem:[%s4686_s15 + $0x160] ss:$8 sps:$4 sm:$0xff]  }
  0x51   : > { %873 = vmatprep.subr.bf16.mxu0 %v4574_v1  ;;  %1099 = vmatprep.subr.bf16.mxu1 %v4574_v1 }
  0x52   : > { %482 = vmatmul.mubr.bf16.gmra.mrb[12].mxu0 %v4244_v27  ;;  %692 = vmatmul.mubr.bf16.gmra.mrb[12].mxu1 %v4245_v28 }
  0x53   : > { %3757 = vmatprep.mubr.msk.bf16.mxu0 %vm396_vm0, %v4246_v29  ;;  %3797 = vmatprep.mubr.msk.bf16.mxu1 %vm396_vm0, %v4248_v30 }
  0x54   : > { %874 = vmatpush1.bf16.msra.mxu0 %v4724_v9  ;;  %1100 = vmatpush1.bf16.msra.mxu1 %v4724_v9  ;;  %v4311_v9 = vld [vmem:[%s4686_s15 + $0x1e0] ss:$8 sps:$4 sm:$0xff]  }
  0x55   : > { %875 = vmatprep.subr.bf16.mxu0 %v4574_v1  ;;  %1101 = vmatprep.subr.bf16.mxu1 %v4574_v1 }
  0x58   : > { %876 = vmatpush1.bf16.msra.mxu0 %v4733_v10  ;;  %1102 = vmatpush1.bf16.msra.mxu1 %v4733_v10  ;;  %v4312_v10 = vld [vmem:[%s4686_s15 + $0x174] ss:$8 sps:$4 sm:$0xff]  }
  0x59   : > { %877 = vmatprep.subr.bf16.mxu0 %v4574_v1  ;;  %1103 = vmatprep.subr.bf16.mxu1 %v4574_v1 }
  0x5a   : > { %490 = vmatmul.mubr.bf16.gmra.mrb[16].mxu0 %v4250_v31  ;;  %700 = vmatmul.mubr.bf16.gmra.mrb[16].mxu1 %v4251_v32 }
  0x5b   : > { %3758 = vmatprep.mubr.msk.bf16.mxu0 %vm396_vm0, %v4252_v33  ;;  %3798 = vmatprep.mubr.msk.bf16.mxu1 %vm396_vm0, %v4254_v34 }
  0x5c   : > { %878 = vmatpush1.bf16.msra.mxu0 %v4742_v11  ;;  %1104 = vmatpush1.bf16.msra.mxu1 %v4742_v11  ;;  %v4315_v11 = vld [vmem:[%s4686_s15 + $0x1f4] ss:$8 sps:$4 sm:$0xff]  }
  0x5d   : > { %879 = vmatprep.subr.bf16.mxu0 %v4574_v1  ;;  %1105 = vmatprep.subr.bf16.mxu1 %v4574_v1 }
  0x60   : > { %880 = vmatpush1.bf16.msra.mxu0 %v4751_v12  ;;  %1106 = vmatpush1.bf16.msra.mxu1 %v4751_v12  ;;  %v4314_v12 = vld [vmem:[%s4686_s15 + $0x170] ss:$8 sps:$4 sm:$0xff]   ;;  %s4575_s15 = smov 96  }
  0x61   : > { %881 = vmatprep.subr.bf16.mxu0 %v4574_v1  ;;  %1107 = vmatprep.subr.bf16.mxu1 %v4574_v1 }
  0x62   : > { %498 = vmatmul.mubr.bf16.gmra.mrb[20].mxu0 %v4256_v35  ;;  %708 = vmatmul.mubr.bf16.gmra.mrb[20].mxu1 %v4257_v36 }
  0x63   : > { %3759 = vmatprep.mubr.msk.bf16.mxu0 %vm396_vm0, %v4258_v37  ;;  %3799 = vmatprep.mubr.msk.bf16.mxu1 %vm396_vm0, %v4260_v38 }
  0x64   : > { %882 = vmatpush1.bf16.msra.mxu0 %v4762_v14  ;;  %1108 = vmatpush1.bf16.msra.mxu1 %v4762_v14 }
  0x6a   : > { %506 = vmatmul.mubr.bf16.gmra.mrb[24].mxu0 %v4262_v39  ;;  %716 = vmatmul.mubr.bf16.gmra.mrb[24].mxu1 %v4263_v40 }
  0x6b   : > { %3760 = vmatprep.mubr.msk.bf16.mxu0 %vm396_vm0, %v4264_v41  ;;  %3800 = vmatprep.mubr.msk.bf16.mxu1 %vm396_vm0, %v4266_v42 }
  0x72   : > { %514 = vmatmul.mubr.bf16.gmra.mrb[28].mxu0 %v4268_v43  ;;  %724 = vmatmul.mubr.bf16.gmra.mrb[28].mxu1 %v4269_v44 }
  0x73   : > { %3833 = vmatprep.mubr.msk.bf16.mxu0 %vm396_vm0, %v4272_v45  ;;  %3873 = vmatprep.mubr.msk.bf16.mxu1 %vm396_vm0, %v4275_v46 }
  0x7a   : > { %894 = vmatmul.mubr.bf16.vlgmr.msra.gmra.mrb[32].mxu0 %v4270_v47  ;;  %1120 = vmatmul.mubr.bf16.vlgmr.msra.gmra.mrb[32].mxu1 %v4273_v48 }
  0x7b   : > { %3834 = vmatprep.mubr.msk.bf16.mxu0 %vm396_vm0, %v4276_v49  ;;  %3874 = vmatprep.mubr.msk.bf16.mxu1 %vm396_vm0, %v4279_v50 }
  0x82   : > { %902 = vmatmul.mubr.bf16.gmra.mrb[36].mxu0 %v4278_v51  ;;  %1128 = vmatmul.mubr.bf16.gmra.mrb[36].mxu1 %v4281_v52 }
  0x83   : > { %3835 = vmatprep.mubr.msk.bf16.mxu0 %vm396_vm0, %v4282_v53  ;;  %3875 = vmatprep.mubr.msk.bf16.mxu1 %vm396_vm0, %v4285_v54 }
  0x8a   : > { %910 = vmatmul.mubr.bf16.gmra.mrb[40].mxu0 %v4284_v55  ;;  %1136 = vmatmul.mubr.bf16.gmra.mrb[40].mxu1 %v4287_v56 }
  0x8b   : > { %3836 = vmatprep.mubr.msk.bf16.mxu0 %vm396_vm0, %v4288_v57  ;;  %3876 = vmatprep.mubr.msk.bf16.mxu1 %vm396_vm0, %v4291_v58 }
  0x92   : > { %918 = vmatmul.mubr.bf16.gmra.mrb[44].mxu0 %v4290_v59  ;;  %1144 = vmatmul.mubr.bf16.gmra.mrb[44].mxu1 %v4293_v60 }
  0x93   : > { %3837 = vmatprep.mubr.msk.bf16.mxu0 %vm396_vm0, %v4294_v61  ;;  %3877 = vmatprep.mubr.msk.bf16.mxu1 %vm396_vm0, %v4297_v62 }
  0x9a   : > { %926 = vmatmul.mubr.bf16.gmra.mrb[48].mxu0 %v4296_v63  ;;  %1152 = vmatmul.mubr.bf16.gmra.mrb[48].mxu1 %v4299_v0 }
  0x9b   : > { %3838 = vmatprep.mubr.msk.bf16.mxu0 %vm396_vm0, %v4300_v2  ;;  %3878 = vmatprep.mubr.msk.bf16.mxu1 %vm396_vm0, %v4303_v3 }
  0xa2   : > { %934 = vmatmul.mubr.bf16.gmra.mrb[52].mxu0 %v4302_v4  ;;  %1160 = vmatmul.mubr.bf16.gmra.mrb[52].mxu1 %v4305_v5 }
  0xa3   : > { %3839 = vmatprep.mubr.msk.bf16.mxu0 %vm396_vm0, %v4306_v6  ;;  %3879 = vmatprep.mubr.msk.bf16.mxu1 %vm396_vm0, %v4309_v7 }
  0xaa   : > { %942 = vmatmul.mubr.bf16.gmra.mrb[56].mxu0 %v4308_v8  ;;  %1168 = vmatmul.mubr.bf16.gmra.mrb[56].mxu1 %v4311_v9 }
  0xab   : > { %3840 = vmatprep.mubr.msk.bf16.mxu0 %vm396_vm0, %v4312_v10  ;;  %3880 = vmatprep.mubr.msk.bf16.mxu1 %vm396_vm0, %v4315_v11 }
  0xb2   : > { %950 = vmatmul.mubr.bf16.gmra.mrb[60].mxu0 %v4314_v12  ;;  %1176 = vmatmul.mubr.bf16.gmra.mrb[60].mxu1 %v4317_v13 }
  0xb3   : > { %1494 = vmatprep.mubr.bf16.mxu0 %v4574_v1  ;;  %1535 = vmatprep.mubr.bf16.mxu1 %v4574_v1 }
 0x10d   : > { %v4904_v14 = vpop.f32.mrb[0].mxu0  ;;  %v4906_v15 = vpop.f32.mrb[0].mxu1 }
 0x10e   : > { %v732_v16 = vmax.f32 %v4904_v14, %v4906_v15  ;;  %v461_v17 = vpop.f32.mrb[1].mxu0  ;;  %v671_v18 = vpop.f32.mrb[1].mxu1 }
 0x10f   : > { %v4910_v19 = vpop.f32.mrb[2].mxu0  ;;  %v4912_v20 = vpop.f32.mrb[2].mxu1 }
 0x110   : > { %v733_v21 = vmax.f32 %v4910_v19, %v4912_v20  ;;  %v464_v22 = vpop.f32.mrb[3].mxu0  ;;  %v674_v23 = vpop.f32.mrb[3].mxu1 }
 0x115   : > { %v4916_v24 = vpop.f32.mrb[4].mxu0  ;;  %v4918_v25 = vpop.f32.mrb[4].mxu1 }
 0x116   : > { %v734_v26 = vmax.f32 %v4916_v24, %v4918_v25  ;;  %v469_v27 = vpop.f32.mrb[5].mxu0  ;;  %v679_v28 = vpop.f32.mrb[5].mxu1 }
 0x117   : > { %v4922_v29 = vpop.f32.mrb[6].mxu0  ;;  %v4924_v30 = vpop.f32.mrb[6].mxu1 }
 0x118   : > { %v735_v31 = vmax.f32 %v4922_v29, %v4924_v30  ;;  %v472_v32 = vpop.f32.mrb[7].mxu0  ;;  %v682_v33 = vpop.f32.mrb[7].mxu1 }
 0x11d   : > { %v4928_v34 = vpop.f32.mrb[8].mxu0  ;;  %v4930_v35 = vpop.f32.mrb[8].mxu1 }
 0x11e   : > { %v736_v36 = vmax.f32 %v4928_v34, %v4930_v35  ;;  %v477_v37 = vpop.f32.mrb[9].mxu0  ;;  %v687_v38 = vpop.f32.mrb[9].mxu1 }
 0x11f   : > { %v4934_v39 = vpop.f32.mrb[10].mxu0  ;;  %v4936_v40 = vpop.f32.mrb[10].mxu1 }
 0x120   : > { %v737_v41 = vmax.f32 %v4934_v39, %v4936_v40  ;;  %v480_v42 = vpop.f32.mrb[11].mxu0  ;;  %v690_v43 = vpop.f32.mrb[11].mxu1 }
 0x125   : > { %v4940_v44 = vpop.f32.mrb[12].mxu0  ;;  %v4942_v45 = vpop.f32.mrb[12].mxu1 }
 0x126   : > { %v738_v46 = vmax.f32 %v4940_v44, %v4942_v45  ;;  %v485_v47 = vpop.f32.mrb[13].mxu0  ;;  %v695_v48 = vpop.f32.mrb[13].mxu1 }
 0x127   : > { %v4946_v49 = vpop.f32.mrb[14].mxu0  ;;  %v4948_v50 = vpop.f32.mrb[14].mxu1 }
 0x128   : > { %v739_v51 = vmax.f32 %v4946_v49, %v4948_v50  ;;  %v488_v52 = vpop.f32.mrb[15].mxu0  ;;  %v698_v53 = vpop.f32.mrb[15].mxu1 }
 0x12d   : > { %v4952_v54 = vpop.f32.mrb[16].mxu0  ;;  %v4954_v55 = vpop.f32.mrb[16].mxu1 }
 0x12e   : > { %v740_v56 = vmax.f32 %v4952_v54, %v4954_v55  ;;  %v493_v57 = vpop.f32.mrb[17].mxu0  ;;  %v703_v58 = vpop.f32.mrb[17].mxu1 }
 0x12f   : > { %v4958_v59 = vpop.f32.mrb[18].mxu0  ;;  %v4960_v60 = vpop.f32.mrb[18].mxu1 }
 0x130   : > { %v741_v61 = vmax.f32 %v4958_v59, %v4960_v60  ;;  %v496_v62 = vpop.f32.mrb[19].mxu0  ;;  %v706_v63 = vpop.f32.mrb[19].mxu1 }
 0x135   : > { %v4964_v0 = vpop.f32.mrb[20].mxu0  ;;  %v4966_v2 = vpop.f32.mrb[20].mxu1 }
 0x136   : > { %v742_v3 = vmax.f32 %v4964_v0, %v4966_v2  ;;  %v501_v4 = vpop.f32.mrb[21].mxu0  ;;  %v711_v5 = vpop.f32.mrb[21].mxu1 }
 0x137   : > { %v4970_v6 = vpop.f32.mrb[22].mxu0  ;;  %v4972_v7 = vpop.f32.mrb[22].mxu1 }
 0x138   : > { %v743_v8 = vmax.f32 %v4970_v6, %v4972_v7  ;;  %v504_v9 = vpop.f32.mrb[23].mxu0  ;;  %v714_v10 = vpop.f32.mrb[23].mxu1 }
 0x13d   : > { %v4976_v11 = vpop.f32.mrb[24].mxu0  ;;  %v4978_v12 = vpop.f32.mrb[24].mxu1 }
 0x13e   : > { %v744_v13 = vmax.f32 %v4976_v11, %v4978_v12  ;;  %v509_v17 = vpop.f32.mrb[25].mxu0  ;;  %v719_v18 = vpop.f32.mrb[25].mxu1  ;;  %v4318_v11 = vld [vmem:[%s5716_s3 + $0x40] ss:$16 sps:$4 sm:$0xff]   ;;  %v4320_v12 = vld [vmem:[%s5716_s3 + $0x44] ss:$16 sps:$4 sm:$0xff]  }
 0x13f   : > { %v4982_v22 = vpop.f32.mrb[26].mxu0  ;;  %v4984_v23 = vpop.f32.mrb[26].mxu1  ;;  %1462 = vmatprep.subr.bf16.mxu0 %v4320_v12 }
 0x140   : > { %v745_v27 = vmax.f32 %v4982_v22, %v4984_v23  ;;  %v512_v28 = vpop.f32.mrb[27].mxu0  ;;  %v722_v32 = vpop.f32.mrb[27].mxu1  ;;  %v4323_v22 = vld [vmem:[%s5716_s3 + $0x4c] ss:$16 sps:$4 sm:$0xff]   ;;  %v4326_v23 = vld [vmem:[%s5716_s3 + $0x64] ss:$16 sps:$4 sm:$0xff]   ;;  %1463 = vmatpush1.bf16.msra.mxu0 %v4318_v11 }
 0x141   : > { %1503 = vmatprep.subr.bf16.mxu1 %v4323_v22  ;;  %1464 = vmatprep.subr.bf16.mxu0 %v4326_v23  ;;  %v4341_v22 = vld [vmem:[%s5716_s3 + $0x2c] ss:$16 sps:$4 sm:$0xff]  }
 0x145   : > { %v4988_v33 = vpop.f32.mrb[28].mxu0  ;;  %v4990_v37 = vpop.f32.mrb[28].mxu1 }
 0x146   : > { %v746_v38 = vmax.f32 %v4988_v33, %v4990_v37  ;;  %v517_v42 = vpop.f32.mrb[29].mxu0  ;;  %v727_v43 = vpop.f32.mrb[29].mxu1 }
 0x147   : > { %v4994_v47 = vpop.f32.mrb[30].mxu0  ;;  %v4996_v48 = vpop.f32.mrb[30].mxu1 }
 0x148   : > { %v747_v52 = vmax.f32 %v4994_v47, %v4996_v48  ;;  %v520_v53 = vpop.f32.mrb[31].mxu0  ;;  %v730_v57 = vpop.f32.mrb[31].mxu1  ;;  %v4335_v47 = vld [vmem:[%s5716_s3 + $0xc] ss:$16 sps:$4 sm:$0xff]  }
 0x14d   : > { %v895_v58 = vpop.f32.mrb[32].mxu0  ;;  %v1121_v62 = vpop.f32.mrb[32].mxu1 }
 0x14e   : > { %v958_v63 = vmax.f32 %v732_v16, %v895_v58  ;;  %v897_v4 = vpop.f32.mrb[33].mxu0  ;;  %v1123_v5 = vpop.f32.mrb[33].mxu1 }
 0x14f   : > { %v898_v9 = vpop.f32.mrb[34].mxu0  ;;  %v1124_v10 = vpop.f32.mrb[34].mxu1 }
 0x150   : > { %v5003_v17 = vmax.f32 %v958_v63, %v1121_v62  ;;  %v959_v18 = vmax.f32 %v733_v21, %v898_v9  ;;  %v900_v28 = vpop.f32.mrb[35].mxu0  ;;  %v1126_v32 = vpop.f32.mrb[35].mxu1 }
 0x152   : > { %v5008_v42 = vmax.f32 %v959_v18, %v1124_v10 }
 0x154   : > { %1218 = vrot.lane.b32.xlu0 %v5008_v42, %s4575_s15 }
 0x155   : > { %v903_v14 = vpop.f32.mrb[36].mxu0  ;;  %v1129_v15 = vpop.f32.mrb[36].mxu1 }
 0x156   : > { %v960_v16 = vmax.f32 %v734_v26, %v903_v14  ;;  %v905_v43 = vpop.f32.mrb[37].mxu0  ;;  %v1131_v53 = vpop.f32.mrb[37].mxu1 }
 0x157   : > { %v906_v57 = vpop.f32.mrb[38].mxu0  ;;  %v1132_v58 = vpop.f32.mrb[38].mxu1 }
 0x158   : > { %v961_v19 = vmax.f32 %v735_v31, %v906_v57  ;;  %v5018_v20 = vmax.f32 %v960_v16, %v1129_v15  ;;  %1216 = vrot.lane.b32.xlu0 %v5003_v17, %s4575_s15  ;;  %v908_v21 = vpop.f32.mrb[39].mxu0  ;;  %v1134_v62 = vpop.f32.mrb[39].mxu1 }
 0x15a   : > { %v5022_v63 = vmax.f32 %v961_v19, %v1132_v58  ;;  %1220 = vrot.lane.b32.xlu1 %v5018_v20, %s4575_s15 }
 0x15d   : > { %v911_v24 = vpop.f32.mrb[40].mxu0  ;;  %v1137_v25 = vpop.f32.mrb[40].mxu1 }
 0x15e   : > { %v962_v26 = vmax.f32 %v736_v36, %v911_v24  ;;  %1222 = vrot.lane.b32.xlu1 %v5022_v63, %s4575_s15  ;;  %v913_v29 = vpop.f32.mrb[41].mxu0  ;;  %v1139_v30 = vpop.f32.mrb[41].mxu1 }
 0x15f   : > { %v914_v31 = vpop.f32.mrb[42].mxu0  ;;  %v1140_v4 = vpop.f32.mrb[42].mxu1 }
 0x160   : > { %v963_v5 = vmax.f32 %v737_v41, %v914_v31  ;;  %v5034_v9 = vmax.f32 %v962_v26, %v1137_v25  ;;  %v916_v10 = vpop.f32.mrb[43].mxu0  ;;  %v1142_v18 = vpop.f32.mrb[43].mxu1 }
 0x162   : > { %v5036_v28 = vmax.f32 %v963_v5, %v1140_v4  ;;  %1224 = vrot.lane.b32.xlu0 %v5034_v9, %s4575_s15 }
 0x164   : > { %1226 = vrot.lane.b32.xlu1 %v5036_v28, %s4575_s15 }
 0x165   : > { %v919_v34 = vpop.f32.mrb[44].mxu0  ;;  %v1145_v35 = vpop.f32.mrb[44].mxu1 }
 0x166   : > { %v964_v36 = vmax.f32 %v738_v46, %v919_v34  ;;  %v921_v39 = vpop.f32.mrb[45].mxu0  ;;  %v1147_v40 = vpop.f32.mrb[45].mxu1 }
 0x167   : > { %v922_v41 = vpop.f32.mrb[46].mxu0  ;;  %v1148_v32 = vpop.f32.mrb[46].mxu1  ;;  %v4329_v40 = vld [vmem:[%s5716_s3 + $0x6c] ss:$16 sps:$4 sm:$0xff]  }
 0x168   : > { %v965_v14 = vmax.f32 %v739_v51, %v922_v41  ;;  %v5048_v15 = vmax.f32 %v964_v36, %v1145_v35  ;;  %v924_v16 = vpop.f32.mrb[47].mxu0  ;;  %v1150_v43 = vpop.f32.mrb[47].mxu1 }
 0x16a   : > { %v5050_v53 = vmax.f32 %v965_v14, %v1148_v32  ;;  %1228 = vrot.lane.b32.xlu0 %v5048_v15, %s4575_s15 }
 0x16c   : > { %1230 = vrot.lane.b32.xlu1 %v5050_v53, %s4575_s15 }
 0x16d   : > { %v927_v44 = vpop.f32.mrb[48].mxu0  ;;  %v1153_v45 = vpop.f32.mrb[48].mxu1 }
 0x16e   : > { %v966_v46 = vmax.f32 %v740_v56, %v927_v44  ;;  %v929_v49 = vpop.f32.mrb[49].mxu0  ;;  %v1155_v50 = vpop.f32.mrb[49].mxu1  ;;  %v4324_v44 = vld [vmem:[%s5716_s3 + $0x60] ss:$16 sps:$4 sm:$0xff]  }
 0x16f   : > { %v930_v51 = vpop.f32.mrb[50].mxu0  ;;  %v1156_v57 = vpop.f32.mrb[50].mxu1  ;;  %1465 = vmatpush1.bf16.msra.mxu0 %v4324_v44  ;;  %v4332_v50 = vld [vmem:[%s5716_s3 + $0x4] ss:$16 sps:$4 sm:$0xff]  }
 0x170   : > { %v967_v58 = vmax.f32 %v741_v61, %v930_v51  ;;  %v5062_v19 = vmax.f32 %v966_v46, %v1153_v45  ;;  %v932_v21 = vpop.f32.mrb[51].mxu0  ;;  %v1158_v62 = vpop.f32.mrb[51].mxu1  ;;  %v4327_v45 = vld [vmem:[%s5716_s3 + $0x68] ss:$16 sps:$4 sm:$0xff]   ;;  %1587 = vmatprep.subr.bf16.mxu0 %v4332_v50 }
 0x172   : > { %v5064_v24 = vmax.f32 %v967_v58, %v1156_v57  ;;  %1232 = vrot.lane.b32.xlu1 %v5062_v19, %s4575_s15 }
 0x175   : > { %v935_v25 = vpop.f32.mrb[52].mxu0  ;;  %v1161_v54 = vpop.f32.mrb[52].mxu1 }
 0x176   : > { %v968_v55 = vmax.f32 %v742_v3, %v935_v25  ;;  %1234 = vrot.lane.b32.xlu1 %v5064_v24, %s4575_s15  ;;  %v937_v56 = vpop.f32.mrb[53].mxu0  ;;  %v1163_v59 = vpop.f32.mrb[53].mxu1 }
 0x177   : > { %v938_v60 = vpop.f32.mrb[54].mxu0  ;;  %v1164_v61 = vpop.f32.mrb[54].mxu1 }
 0x178   : > { %v969_v26 = vmax.f32 %v743_v8, %v938_v60  ;;  %v5076_v29 = vmax.f32 %v968_v55, %v1161_v54  ;;  %v940_v30 = vpop.f32.mrb[55].mxu0  ;;  %v1166_v31 = vpop.f32.mrb[55].mxu1 }
 0x17a   : > { %v5078_v4 = vmax.f32 %v969_v26, %v1164_v61  ;;  %1236 = vrot.lane.b32.xlu1 %v5076_v29, %s4575_s15 }
 0x17d   : > { %v943_v0 = vpop.f32.mrb[56].mxu0  ;;  %v1169_v2 = vpop.f32.mrb[56].mxu1 }
 0x17e   : > { %v970_v3 = vmax.f32 %v744_v13, %v943_v0  ;;  %1238 = vrot.lane.b32.xlu1 %v5078_v4, %s4575_s15  ;;  %v945_v6 = vpop.f32.mrb[57].mxu0  ;;  %v1171_v7 = vpop.f32.mrb[57].mxu1  ;;  %v4321_v13 = vld [vmem:[%s5716_s3 + $0x48] ss:$16 sps:$4 sm:$0xff]  }
 0x17f   : > { %v946_v8 = vpop.f32.mrb[58].mxu0  ;;  %v1172_v5 = vpop.f32.mrb[58].mxu1  ;;  %1504 = vmatpush1.bf16.msra.mxu1 %v4321_v13  ;;  %v5211_v6 = vld [vmem:[%s5715_s2] ss:$0 sm:$0xff]  ;;  %v4338_v13 = vld [vmem:[%s5716_s3 + $0x24] ss:$16 sps:$4 sm:$0xff]  }
 0x180   : > { %v971_v10 = vmax.f32 %v745_v27, %v946_v8  ;;  %v5090_v18 = vmax.f32 %v970_v3, %v1169_v2  ;;  %v948_v34 = vpop.f32.mrb[59].mxu0  ;;  %v1174_v35 = vpop.f32.mrb[59].mxu1  ;;  %1505 = vmatprep.subr.bf16.mxu1 %v4329_v40 }
 0x181   : > { %v4330_v35 = vld [vmem:[%s5716_s3] ss:$16 sps:$4 sm:$0xff]  }
 0x182   : > { %v5092_v36 = vmax.f32 %v971_v10, %v1172_v5  ;;  %1240 = vrot.lane.b32.xlu1 %v5090_v18, %s4575_s15 }
 0x183   : > { %1506 = vmatpush1.bf16.msra.mxu1 %v4327_v45 }
 0x184   : > { %1628 = vmatprep.subr.bf16.mxu1 %v4335_v47 }
 0x185   : > { %v951_v27 = vpop.f32.mrb[60].mxu0  ;;  %v1177_v39 = vpop.f32.mrb[60].mxu1 }
 0x186   : > { %v972_v41 = vmax.f32 %v746_v38, %v951_v27  ;;  %1242 = vrot.lane.b32.xlu1 %v5092_v36, %s4575_s15  ;;  %v953_v32 = vpop.f32.mrb[61].mxu0  ;;  %v1179_v14 = vpop.f32.mrb[61].mxu1  ;;  %v4336_v27 = vld [vmem:[%s5716_s3 + $0x20] ss:$16 sps:$4 sm:$0xff]  }
 0x187   : > { %v954_v16 = vpop.f32.mrb[62].mxu0  ;;  %v1180_v43 = vpop.f32.mrb[62].mxu1  ;;  %v4344_v32 = vld [vmem:[%s5716_s3 + $0x84] ss:$16 sps:$4 sm:$0xff]   ;;  %v4347_v14 = vld [vmem:[%s5716_s3 + $0x8c] ss:$16 sps:$4 sm:$0xff]  }
 0x188   : > { %v973_v33 = vmax.f32 %v747_v52, %v954_v16  ;;  %v1198_v37 = vmax.f32 %v972_v41, %v1177_v39  ;;  %v956_v38 = vpop.f32.mrb[63].mxu0  ;;  %v1182_v46 = vpop.f32.mrb[63].mxu1  ;;  %v4339_v39 = vld [vmem:[%s5716_s3 + $0x28] ss:$16 sps:$4 sm:$0xff]   ;;  %v4342_v16 = vld [vmem:[%s5716_s3 + $0x80] ss:$16 sps:$4 sm:$0xff]  }
 0x189   : > { %v4348_v46 = vld [vmem:[%s5716_s3 + $0xa0] ss:$16 sps:$4 sm:$0xff]  }
 0x18a   : > { %v1199_v49 = vmax.f32 %v973_v33, %v1180_v43  ;;  %1244 = vrot.lane.b32.xlu1 %v1198_v37, %s4575_s15  ;;  %v4345_v43 = vld [vmem:[%s5716_s3 + $0x88] ss:$16 sps:$4 sm:$0xff]   ;;  %v4350_v33 = vld [vmem:[%s5716_s3 + $0xa4] ss:$16 sps:$4 sm:$0xff]  }
 0x18e   : > { %1246 = vrot.lane.b32.xlu1 %v1199_v49, %s4575_s15 }
 0x1c6   : > { %v1219_v48 = vpop.permute.xlu0 %1218 }
 0x1c7   : > { %v1265_v52 = vmax.f32 %v5008_v42, %v1219_v48  ;;  %v4356_v48 = vld [vmem:[%s5716_s3 + $0xc4] ss:$16 sps:$4 sm:$0xff]  }
 0x1c9   : > { %1298 = vrot.lane.b32.xlu0 %v1265_v52, %s4576_s6 }
 0x1ca   : > { %v1217_v51 = vpop.permute.xlu0 %1216 }
 0x1cb   : > { %v1264_v57 = vmax.f32 %v5003_v17, %v1217_v51  ;;  %v4354_v51 = vld [vmem:[%s5716_s3 + $0xc0] ss:$16 sps:$4 sm:$0xff]  }
 0x1cc   : > { %v1221_v58 = vpop.permute.xlu1 %1220 }
 0x1cd   : > { %1296 = vrot.lane.b32.xlu0 %v1264_v57, %s4576_s6  ;;  %v5141_v21 = vmax.f32 %v5018_v20, %v1221_v58 }
 0x1d0   : > { %v1223_v62 = vpop.permute.xlu1 %1222 }
 0x1d1   : > { %1300 = vrot.lane.b32.xlu0 %v5141_v21, %s4576_s6  ;;  %v5146_v25 = vmax.f32 %v5022_v63, %v1223_v62  ;;  %v4362_v62 = vld [vmem:[%s5716_s3 + $0xe4] ss:$16 sps:$4 sm:$0xff]  }
 0x1d4   : > { %v1225_v42 = vpop.permute.xlu0 %1224 }
 0x1d5   : > { %1302 = vrot.lane.b32.xlu0 %v5146_v25, %s4576_s6  ;;  %v5151_v54 = vmax.f32 %v5034_v9, %v1225_v42 }
 0x1d6   : > { %v1227_v17 = vpop.permute.xlu1 %1226 }
 0x1d7   : > { %v5156_v20 = vmax.f32 %v5036_v28, %v1227_v17  ;;  %v4360_v17 = vld [vmem:[%s5716_s3 + $0xe0] ss:$16 sps:$4 sm:$0xff]  }
 0x1d9   : > { %1304 = vrot.lane.b32.xlu0 %v5151_v54, %s4576_s6 }
 0x1dc   : > { %v1229_v55 = vpop.permute.xlu0 %1228 }
 0x1dd   : > { %1306 = vrot.lane.b32.xlu0 %v5156_v20, %s4576_s6  ;;  %v5161_v63 = vmax.f32 %v5048_v15, %v1229_v55  ;;  %v4363_v55 = vld [vmem:[%s5716_s3 + $0xe8] ss:$16 sps:$4 sm:$0xff]  }
 0x1de   : > { %v1231_v56 = vpop.permute.xlu1 %1230 }
 0x1df   : > { %v5166_v9 = vmax.f32 %v5050_v53, %v1231_v56 }
 0x1e1   : > { %1308 = vrot.lane.b32.xlu0 %v5161_v63, %s4576_s6 }
 0x1e4   : > { %v1233_v59 = vpop.permute.xlu1 %1232 }
 0x1e5   : > { %1310 = vrot.lane.b32.xlu0 %v5166_v9, %s4576_s6  ;;  %v5171_v28 = vmax.f32 %v5062_v19, %v1233_v59 }
 0x1e8   : > { %v1235_v60 = vpop.permute.xlu1 %1234 }
 0x1e9   : > { %v5174_v61 = vmax.f32 %v5064_v24, %v1235_v60  ;;  %1312 = vrot.lane.b32.xlu0 %v5171_v28, %s4576_s6  ;;  %v4368_v60 = vld [vmem:[%s5716_s3 + $0x104] ss:$16 sps:$4 sm:$0xff]  }
 0x1eb   : > { %1314 = vrot.lane.b32.xlu1 %v5174_v61, %s4576_s6 }
 0x1ec   : > { %v1237_v15 = vpop.permute.xlu1 %1236 }
 0x1ed   : > { %v5181_v53 = vmax.f32 %v5076_v29, %v1237_v15  ;;  %v4371_v15 = vld [vmem:[%s5716_s3 + $0x10c] ss:$16 sps:$4 sm:$0xff]  }
 0x1ef   : > { %1316 = vrot.lane.b32.xlu0 %v5181_v53, %s4576_s6 }
 0x1f0   : > { %v1239_v26 = vpop.permute.xlu1 %1238 }
 0x1f1   : > { %v5186_v19 = vmax.f32 %v5078_v4, %v1239_v26  ;;  %v4369_v26 = vld [vmem:[%s5716_s3 + $0x108] ss:$16 sps:$4 sm:$0xff]  }
 0x1f3   : > { %1318 = vrot.lane.b32.xlu1 %v5186_v19, %s4576_s6 }
 0x1f4   : > { %v1241_v24 = vpop.permute.xlu1 %1240 }
 0x1f5   : > { %v5191_v30 = vmax.f32 %v5090_v18, %v1241_v24 }
 0x1f7   : > { %1320 = vrot.lane.b32.xlu0 %v5191_v30, %s4576_s6 }
 0x1f8   : > { %v1243_v31 = vpop.permute.xlu1 %1242 }
 0x1f9   : > { %v5196_v29 = vmax.f32 %v5092_v36, %v1243_v31  ;;  %v4333_v36 = vld [vmem:[%s5716_s3 + $0x8] ss:$16 sps:$4 sm:$0xff]  }
 0x1fb   : > { %1322 = vrot.lane.b32.xlu1 %v5196_v29, %s4576_s6 }
 0x1fc   : > { %v1245_v0 = vpop.permute.xlu1 %1244 }
 0x1fd   : > { %v5200_v4 = vmax.f32 %v1198_v37, %v1245_v0  ;;  %v4353_v37 = vld [vmem:[%s5716_s3 + $0xac] ss:$16 sps:$4 sm:$0xff]   ;;  %v4374_v0 = vld [vmem:[%s5716_s3 + $0x124] ss:$16 sps:$4 sm:$0xff]  }
 0x1ff   : > { %1324 = vrot.lane.b32.xlu0 %v5200_v4, %s4576_s6 }
 0x200   : > { %v1247_v2 = vpop.permute.xlu1 %1246 }
 0x201   : > { %v5204_v3 = vmax.f32 %v1199_v49, %v1247_v2  ;;  %v4351_v49 = vld [vmem:[%s5716_s3 + $0xa8] ss:$16 sps:$4 sm:$0xff]   ;;  %v4377_v2 = vld [vmem:[%s5716_s3 + $0x12c] ss:$16 sps:$4 sm:$0xff]  }
 0x203   : > { %1326 = vrot.lane.b32.xlu1 %v5204_v3, %s4576_s6  ;;  %s3723_s6 = sshll.u32 %s215_s30, 5 }
 0x204   : > { %s217_s9 = scalar_lea.vmem [#allocation2], %s3723_s6 }
 0x205   : > { %s3660_s10 = sshll.u32 %s217_s9, 4  ;;  %s5671_s10 = int_to_ptr.vmem [resolvable:$true] %s3660_s10 }
 0x206   : > { %s4510_s14 = scalar_lea.vmem %s5671_s10, 512  ;;  %p4517_p0 = scmp.lt.s32.totalorder %s5671_s10, %s4515_s17 }
 0x207   : > { %p4511_p11 = scmp.ne.s32.totalorder %s5671_s10, %s4510_s14  ;;  %p4518_p1 = scmp.lt.s32.totalorder %s4516_s23, %s4510_s14 }
 0x209   : > { %p4512_p12 = pnand %p4511_p11, %p4646_p5  ;;  %p4519_p2 = por %p4518_p1, %p4517_p0 }
 0x20b   : > { %p4513_p13 = pneg %p4512_p12 }
 0x20d   : > { %p4520_p3 = pnand %p4519_p2, %p4513_p13 }
 0x23b   : > { %v1299_v7 = vpop.permute.xlu0 %1298 }
 0x23c   : > { %v1345_v8 = vmax.f32 %v1265_v52, %v1299_v7  ;;  %v4359_v52 = vld [vmem:[%s5716_s3 + $0xcc] ss:$16 sps:$4 sm:$0xff]  }
 0x23e   : > { %v1368_v5 = vadd.f32 %v5211_v6, %v1345_v8  ;;  %v4372_v8 = vld [vmem:[%s5716_s3 + $0x120] ss:$16 sps:$4 sm:$0xff]  }
 0x23f   : > { %v1297_v10 = vpop.permute.xlu0 %1296 }
 0x240   : > { %v1384_v18 = vmax.f32 %v1368_v5, 0.0  ;;  %v1344_v34 = vmax.f32 %v1264_v57, %v1297_v10  ;;  %v4357_v57 = vld [vmem:[%s5716_s3 + $0xc8] ss:$16 sps:$4 sm:$0xff]  }
 0x241   : > { %v4375_v5 = vld [vmem:[%s5716_s3 + $0x128] ss:$16 sps:$4 sm:$0xff]  }
 0x242   : > { %v1408_v11 = vpack.c.bf16 %v1384_v18, %v1384_v18  ;;  %v1367_v12 = vadd.f32 %v5211_v6, %v1344_v34  ;;  %v4380_v34 = vld [vmem:[%s5716_s3 + $0x144] ss:$16 sps:$4 sm:$0xff]  }
 0x243   : > { %v1301_v23 = vpop.permute.xlu0 %1300 }
 0x244   : > { %3898 = vmatmul.mubr.msk.bf16.vlgmr.msra.gmra.mrb[64].mxu0 %vm1458_vm2, %v1408_v11  ;;  %3899 = vmatmul.mubr.msk.bf16.vlgmr.msra.gmra.mrb[64].mxu1 %vm1458_vm2, %v1408_v11  ;;  %v1383_v40 = vmax.f32 %v1367_v12, 0.0  ;;  %v1346_v41 = vmax.f32 %v5141_v21, %v1301_v23 }
 0x245   : > { %1588 = vmatpush1.bf16.msra.mxu0 %v4330_v35  ;;  %1629 = vmatpush1.bf16.msra.mxu1 %v4333_v36  ;;  %v4383_v35 = vld [vmem:[%s5716_s3 + $0x14c] ss:$16 sps:$4 sm:$0xff]   ;;  %v4381_v36 = vld [vmem:[%s5716_s3 + $0x148] ss:$16 sps:$4 sm:$0xff]  }
 0x246   : > { %1589 = vmatprep.subr.bf16.mxu0 %v4338_v13  ;;  %1630 = vmatprep.subr.bf16.mxu1 %v4341_v22  ;;  %v1399_v44 = vpack.c.bf16 %v1383_v40, %v1383_v40  ;;  %v1369_v45 = vadd.f32 %v5211_v6, %v1346_v41  ;;  %v4386_v13 = vld [vmem:[%s5716_s3 + $0x164] ss:$16 sps:$4 sm:$0xff]   ;;  %v4389_v22 = vld [vmem:[%s5716_s3 + $0x16c] ss:$16 sps:$4 sm:$0xff]  }
 0x247   : > { %1619 = vmatprep.mubr.bf16.mxu0 %v4574_v1  ;;  %1660 = vmatprep.mubr.bf16.mxu1 %v4574_v1  ;;  %v1303_v38 = vpop.permute.xlu0 %1302 }
 0x248   : > { %v1385_v50 = vmax.f32 %v1369_v45, 0.0  ;;  %v1347_v47 = vmax.f32 %v5146_v25, %v1303_v38  ;;  %v4365_v25 = vld [vmem:[%s5716_s3 + $0xec] ss:$16 sps:$4 sm:$0xff]   ;;  %v4398_v45 = vld [vmem:[%s5716_s3 + $0x1a4] ss:$16 sps:$4 sm:$0xff]  }
 0x249   : > { %1590 = vmatpush1.bf16.msra.mxu0 %v4336_v27  ;;  %1631 = vmatpush1.bf16.msra.mxu1 %v4339_v39  ;;  %v4384_v27 = vld [vmem:[%s5716_s3 + $0x160] ss:$16 sps:$4 sm:$0xff]   ;;  %v4387_v39 = vld [vmem:[%s5716_s3 + $0x168] ss:$16 sps:$4 sm:$0xff]  }
 0x24a   : > { %1722 = vmatprep.subr.bf16.mxu0 %v4344_v32  ;;  %1763 = vmatprep.subr.bf16.mxu1 %v4347_v14  ;;  %v1669_v58 = vpack.c.bf16 %v1385_v50, %v1385_v50  ;;  %v1370_v21 = vadd.f32 %v5211_v6, %v1347_v47  ;;  %v4392_v32 = vld [vmem:[%s5716_s3 + $0x184] ss:$16 sps:$4 sm:$0xff]   ;;  %v4395_v14 = vld [vmem:[%s5716_s3 + $0x18c] ss:$16 sps:$4 sm:$0xff]   ;;  %v4396_v38 = vld [vmem:[%s5716_s3 + $0x1a0] ss:$16 sps:$4 sm:$0xff]  }
 0x24b   : > { %v1305_v42 = vpop.permute.xlu0 %1304  ;;  %v4404_v47 = vld [vmem:[%s5716_s3 + $0x1c4] ss:$16 sps:$4 sm:$0xff]  }
 0x24c   : > { %3908 = vmatmul.mubr.msk.bf16.vlgmr.msra.gmra.mrb[68].mxu0 %vm1458_vm2, %v1399_v44  ;;  %3909 = vmatmul.mubr.msk.bf16.vlgmr.msra.gmra.mrb[68].mxu1 %vm1458_vm2, %v1399_v44  ;;  %v1386_v56 = vmax.f32 %v1370_v21, 0.0  ;;  %v1348_v59 = vmax.f32 %v5151_v54, %v1305_v42  ;;  %v4366_v54 = vld [vmem:[%s5716_s3 + $0x100] ss:$16 sps:$4 sm:$0xff]   ;;  %v4413_v21 = vld [vmem:[%s5716_s3 + $0x1ec] ss:$16 sps:$4 sm:$0xff]  }
 0x24d   : > { %1723 = vmatpush1.bf16.msra.mxu0 %v4342_v16  ;;  %1764 = vmatpush1.bf16.msra.mxu1 %v4345_v43  ;;  %v4393_v16 = vld [vmem:[%s5716_s3 + $0x188] ss:$16 sps:$4 sm:$0xff]  }
 0x24e   : > { %1724 = vmatprep.subr.bf16.mxu0 %v4350_v33  ;;  %1765 = vmatprep.subr.bf16.mxu1 %v4353_v37  ;;  %v1808_v24 = vpack.c.bf16 %v1386_v56, %v1386_v56  ;;  %v1371_v31 = vadd.f32 %v5211_v6, %v1348_v59  ;;  %v4401_v33 = vld [vmem:[%s5716_s3 + $0x1ac] ss:$16 sps:$4 sm:$0xff]   ;;  %v4411_v42 = vld [vmem:[%s5716_s3 + $0x1e8] ss:$16 sps:$4 sm:$0xff]   ;;  %v4416_v56 = vld [vmem:[%s5716_s3 + $0x204] ss:$16 sps:$4 sm:$0xff]  }
 0x24f   : > { %1754 = vmatprep.mubr.bf16.mxu0 %v4574_v1  ;;  %1795 = vmatprep.mubr.bf16.mxu1 %v4574_v1  ;;  %v1307_v7 = vpop.permute.xlu0 %1306  ;;  %v4419_v59 = vld [vmem:[%s5716_s3 + $0x20c] ss:$16 sps:$4 sm:$0xff]  }
 0x250   : > { %v1387_v10 = vmax.f32 %v1371_v31, 0.0  ;;  %v1349_v18 = vmax.f32 %v5156_v20, %v1307_v7  ;;  %v4378_v20 = vld [vmem:[%s5716_s3 + $0x140] ss:$16 sps:$4 sm:$0xff]  }
 0x251   : > { %1725 = vmatpush1.bf16.msra.mxu0 %v4348_v46  ;;  %1766 = vmatpush1.bf16.msra.mxu1 %v4351_v49  ;;  %v4399_v46 = vld [vmem:[%s5716_s3 + $0x1a8] ss:$16 sps:$4 sm:$0xff]  }
 0x252   : > { %1861 = vmatprep.subr.bf16.mxu0 %v4356_v48  ;;  %1902 = vmatprep.subr.bf16.mxu1 %v4359_v52  ;;  %v1947_v11 = vpack.c.bf16 %v1387_v10, %v1387_v10  ;;  %v1372_v12 = vadd.f32 %v5211_v6, %v1349_v18  ;;  %v4407_v48 = vld [vmem:[%s5716_s3 + $0x1cc] ss:$16 sps:$4 sm:$0xff]   ;;  %v4405_v52 = vld [vmem:[%s5716_s3 + $0x1c8] ss:$16 sps:$4 sm:$0xff]  }
 0x253   : > { %v1309_v23 = vpop.permute.xlu0 %1308  ;;  %v4431_v10 = vld [vmem:[%s5716_s3 + $0x24c] ss:$16 sps:$4 sm:$0xff]   ;;  %v4429_v18 = vld [vmem:[%s5716_s3 + $0x248] ss:$16 sps:$4 sm:$0xff]  }
 0x254   : > { %3926 = vmatmul.mubr.msk.bf16.vlgmr.msra.gmra.mrb[72].mxu0 %vm1458_vm2, %v1669_v58  ;;  %3927 = vmatmul.mubr.msk.bf16.vlgmr.msra.gmra.mrb[72].mxu1 %vm1458_vm2, %v1669_v58  ;;  %v1388_v40 = vmax.f32 %v1372_v12, 0.0  ;;  %v1350_v41 = vmax.f32 %v5161_v63, %v1309_v23  ;;  %v4390_v63 = vld [vmem:[%s5716_s3 + $0x180] ss:$16 sps:$4 sm:$0xff]   ;;  %v4410_v58 = vld [vmem:[%s5716_s3 + $0x1e4] ss:$16 sps:$4 sm:$0xff]  }
 0x255   : > { %1862 = vmatpush1.bf16.msra.mxu0 %v4354_v51  ;;  %1903 = vmatpush1.bf16.msra.mxu1 %v4357_v57  ;;  %v4432_v12 = vld [vmem:[%s5716_s3 + $0x260] ss:$16 sps:$4 sm:$0xff]  }
 0x256   : > { %1863 = vmatprep.subr.bf16.mxu0 %v4362_v62  ;;  %1904 = vmatprep.subr.bf16.mxu1 %v4365_v25  ;;  %v2086_v43 = vpack.c.bf16 %v1388_v40, %v1388_v40  ;;  %v1373_v44 = vadd.f32 %v5211_v6, %v1350_v41  ;;  %v4408_v25 = vld [vmem:[%s5716_s3 + $0x1e0] ss:$16 sps:$4 sm:$0xff]   ;;  %v4441_v40 = vld [vmem:[%s5716_s3 + $0x288] ss:$16 sps:$4 sm:$0xff]  }
 0x257   : > { %1893 = vmatprep.mubr.bf16.mxu0 %v4574_v1  ;;  %1934 = vmatprep.mubr.bf16.mxu1 %v4574_v1  ;;  %v1311_v37 = vpop.permute.xlu0 %1310 }
 0x258   : > { %v1389_v49 = vmax.f32 %v1373_v44, 0.0  ;;  %v1351_v50 = vmax.f32 %v5166_v9, %v1311_v37  ;;  %v4402_v9 = vld [vmem:[%s5716_s3 + $0x1c0] ss:$16 sps:$4 sm:$0xff]   ;;  %v4447_v44 = vld [vmem:[%s5716_s3 + $0x2a8] ss:$16 sps:$4 sm:$0xff]  }
 0x259   : > { %1864 = vmatpush1.bf16.msra.mxu0 %v4360_v17  ;;  %1905 = vmatpush1.bf16.msra.mxu1 %v4363_v55  ;;  %v4452_v37 = vld [vmem:[%s5716_s3 + $0x2c4] ss:$16 sps:$4 sm:$0xff]  }
 0x25a   : > { %2000 = vmatprep.subr.bf16.mxu0 %v4368_v60  ;;  %2041 = vmatprep.subr.bf16.mxu1 %v4371_v15  ;;  %v2225_v51 = vpack.c.bf16 %v1389_v49, %v1389_v49  ;;  %v1374_v57 = vadd.f32 %v5211_v6, %v1351_v50  ;;  %v4417_v60 = vld [vmem:[%s5716_s3 + $0x208] ss:$16 sps:$4 sm:$0xff]  }
 0x25b   : > { %v1313_v62 = vpop.permute.xlu0 %1312 }
 0x25c   : > { %3944 = vmatmul.mubr.msk.bf16.vlgmr.msra.gmra.mrb[76].mxu0 %vm1458_vm2, %v1808_v24  ;;  %3945 = vmatmul.mubr.msk.bf16.vlgmr.msra.gmra.mrb[76].mxu1 %vm1458_vm2, %v1808_v24  ;;  %v1390_v17 = vmax.f32 %v1374_v57, 0.0  ;;  %v1352_v55 = vmax.f32 %v5171_v28, %v1313_v62  ;;  %v4414_v28 = vld [vmem:[%s5716_s3 + $0x200] ss:$16 sps:$4 sm:$0xff]   ;;  %v4425_v24 = vld [vmem:[%s5716_s3 + $0x22c] ss:$16 sps:$4 sm:$0xff]  }
 0x25d   : > { %2001 = vmatpush1.bf16.msra.mxu0 %v4366_v54  ;;  %2042 = vmatpush1.bf16.msra.mxu1 %v4369_v26  ;;  %v4422_v26 = vld [vmem:[%s5716_s3 + $0x224] ss:$16 sps:$4 sm:$0xff]   ;;  %v1315_v31 = vpop.permute.xlu1 %1314  ;;  %v4467_v62 = vld [vmem:[%s5716_s3 + $0x30c] ss:$16 sps:$4 sm:$0xff]  }
 0x25e   : > { %2002 = vmatprep.subr.bf16.mxu0 %v4374_v0  ;;  %2043 = vmatprep.subr.bf16.mxu1 %v4377_v2  ;;  %v2364_v15 = vpack.c.bf16 %v1390_v17, %v1390_v17  ;;  %v1375_v54 = vadd.f32 %v5211_v6, %v1352_v55  ;;  %v4420_v0 = vld [vmem:[%s5716_s3 + $0x220] ss:$16 sps:$4 sm:$0xff]   ;;  %v4423_v2 = vld [vmem:[%s5716_s3 + $0x228] ss:$16 sps:$4 sm:$0xff]   ;;  %v4470_v55 = vld [vmem:[%s5716_s3 + $0x324] ss:$16 sps:$4 sm:$0xff]  }
 0x25f   : > { %2032 = vmatprep.mubr.bf16.mxu0 %v4574_v1  ;;  %2073 = vmatprep.mubr.bf16.mxu1 %v4574_v1 }
 0x260   : > { %v1391_v7 = vmax.f32 %v1375_v54, 0.0 }
 0x261   : > { %2003 = vmatpush1.bf16.msra.mxu0 %v4372_v8  ;;  %2044 = vmatpush1.bf16.msra.mxu1 %v4375_v5  ;;  %v1353_v8 = vmax.f32 %v5174_v61, %v1315_v31  ;;  %v4428_v5 = vld [vmem:[%s5716_s3 + $0x244] ss:$16 sps:$4 sm:$0xff]   ;;  %v4426_v61 = vld [vmem:[%s5716_s3 + $0x240] ss:$16 sps:$4 sm:$0xff]   ;;  %v4477_v31 = vld [vmem:[%s5716_s3 + $0x348] ss:$16 sps:$4 sm:$0xff]  }
 0x262   : > { %2139 = vmatprep.subr.bf16.mxu0 %v4380_v34  ;;  %2180 = vmatprep.subr.bf16.mxu1 %v4383_v35  ;;  %v2503_v34 = vpack.c.bf16 %v1391_v7, %v1391_v7  ;;  %v4482_v7 = vld [vmem:[%s5716_s3 + $0x364] ss:$16 sps:$4 sm:$0xff]  }
 0x263   : > { %v1376_v35 = vadd.f32 %v5211_v6, %v1353_v8  ;;  %v4485_v8 = vld [vmem:[%s5716_s3 + $0x36c] ss:$16 sps:$4 sm:$0xff]  }
 0x264   : > { %3962 = vmatmul.mubr.msk.bf16.vlgmr.msra.gmra.mrb[80].mxu0 %vm1458_vm2, %v1947_v11  ;;  %3963 = vmatmul.mubr.msk.bf16.vlgmr.msra.gmra.mrb[80].mxu1 %vm1458_vm2, %v1947_v11  ;;  %v1317_v11 = vpop.permute.xlu0 %1316 }
 0x265   : > { %2140 = vmatpush1.bf16.msra.mxu0 %v4378_v20  ;;  %2181 = vmatpush1.bf16.msra.mxu1 %v4381_v36  ;;  %v4434_v20 = vld [vmem:[%s5716_s3 + $0x264] ss:$16 sps:$4 sm:$0xff]   ;;  %v4437_v36 = vld [vmem:[%s5716_s3 + $0x26c] ss:$16 sps:$4 sm:$0xff]   ;;  %v1354_v23 = vmax.f32 %v5181_v53, %v1317_v11  ;;  %v4438_v53 = vld [vmem:[%s5716_s3 + $0x280] ss:$16 sps:$4 sm:$0xff]  }
 0x266   : > { %2141 = vmatprep.subr.bf16.mxu0 %v4386_v13  ;;  %2182 = vmatprep.subr.bf16.mxu1 %v4389_v22  ;;  %v4435_v13 = vld [vmem:[%s5716_s3 + $0x268] ss:$16 sps:$4 sm:$0xff]   ;;  %v1392_v22 = vmax.f32 %v1376_v35, 0.0  ;;  %v4488_v35 = vld [vmem:[%s5716_s3 + $0x384] ss:$16 sps:$4 sm:$0xff]  }
 0x267   : > { %2171 = vmatprep.mubr.bf16.mxu0 %v4574_v1  ;;  %2212 = vmatprep.mubr.bf16.mxu1 %v4574_v1 }
 0x268   : > { %v2642_v41 = vpack.c.bf16 %v1392_v22, %v1392_v22  ;;  %v4497_v22 = vld [vmem:[%s5716_s3 + $0x3ac] ss:$16 sps:$4 sm:$0xff]  }
 0x269   : > { %2142 = vmatpush1.bf16.msra.mxu0 %v4384_v27  ;;  %2183 = vmatpush1.bf16.msra.mxu1 %v4387_v39  ;;  %v4440_v27 = vld [vmem:[%s5716_s3 + $0x284] ss:$16 sps:$4 sm:$0xff]   ;;  %v4443_v39 = vld [vmem:[%s5716_s3 + $0x28c] ss:$16 sps:$4 sm:$0xff]  }
 0x26a   : > { %2278 = vmatprep.subr.bf16.mxu0 %v4392_v32  ;;  %2319 = vmatprep.subr.bf16.mxu1 %v4395_v14  ;;  %v1377_v32 = vadd.f32 %v5211_v6, %v1354_v23  ;;  %v4446_v14 = vld [vmem:[%s5716_s3 + $0x2a4] ss:$16 sps:$4 sm:$0xff]  }
 0x26c   : > { %3980 = vmatmul.mubr.msk.bf16.vlgmr.msra.gmra.mrb[84].mxu0 %vm1458_vm2, %v2086_v43  ;;  %3981 = vmatmul.mubr.msk.bf16.vlgmr.msra.gmra.mrb[84].mxu1 %vm1458_vm2, %v2086_v43  ;;  %v4444_v43 = vld [vmem:[%s5716_s3 + $0x2a0] ss:$16 sps:$4 sm:$0xff]  }
 0x26d   : > { %2279 = vmatpush1.bf16.msra.mxu0 %v4390_v63  ;;  %2320 = vmatpush1.bf16.msra.mxu1 %v4393_v16  ;;  %v4449_v63 = vld [vmem:[%s5716_s3 + $0x2ac] ss:$16 sps:$4 sm:$0xff]   ;;  %v1319_v16 = vpop.permute.xlu1 %1318 }
 0x26e   : > { %2280 = vmatprep.subr.bf16.mxu0 %v4398_v45  ;;  %2321 = vmatprep.subr.bf16.mxu1 %v4401_v33  ;;  %v1393_v45 = vmax.f32 %v1377_v32, 0.0  ;;  %v1355_v33 = vmax.f32 %v5186_v19, %v1319_v16  ;;  %v4450_v19 = vld [vmem:[%s5716_s3 + $0x2c0] ss:$16 sps:$4 sm:$0xff]   ;;  %v4503_v32 = vld [vmem:[%s5716_s3 + $0x3cc] ss:$16 sps:$4 sm:$0xff]  }
 0x26f   : > { %2310 = vmatprep.mubr.bf16.mxu0 %v4574_v1  ;;  %2351 = vmatprep.mubr.bf16.mxu1 %v4574_v1 }
 0x270   : > { %v2781_v49 = vpack.c.bf16 %v1393_v45, %v1393_v45  ;;  %v1378_v50 = vadd.f32 %v5211_v6, %v1355_v33  ;;  %v4507_v45 = vld [vmem:[%s5716_s3 + $0x3e8] ss:$16 sps:$4 sm:$0xff]  }
 0x271   : > { %2281 = vmatpush1.bf16.msra.mxu0 %v4396_v38  ;;  %2322 = vmatpush1.bf16.msra.mxu1 %v4399_v46  ;;  %v4455_v38 = vld [vmem:[%s5716_s3 + $0x2cc] ss:$16 sps:$4 sm:$0xff]   ;;  %v4453_v46 = vld [vmem:[%s5716_s3 + $0x2c8] ss:$16 sps:$4 sm:$0xff]  }
 0x272   : > { %2417 = vmatprep.subr.bf16.mxu0 %v4404_v47  ;;  %2458 = vmatprep.subr.bf16.mxu1 %v4407_v48  ;;  %v4458_v47 = vld [vmem:[%s5716_s3 + $0x2e4] ss:$16 sps:$4 sm:$0xff]   ;;  %v4461_v48 = vld [vmem:[%s5716_s3 + $0x2ec] ss:$16 sps:$4 sm:$0xff]   ;;  %v1394_v57 = vmax.f32 %v1378_v50, 0.0 }
 0x274   : > { %3998 = vmatmul.mubr.msk.bf16.vlgmr.msra.gmra.mrb[88].mxu0 %vm1458_vm2, %v2225_v51  ;;  %3999 = vmatmul.mubr.msk.bf16.vlgmr.msra.gmra.mrb[88].mxu1 %vm1458_vm2, %v2225_v51  ;;  %v4459_v51 = vld [vmem:[%s5716_s3 + $0x2e8] ss:$16 sps:$4 sm:$0xff]  }
 0x275   : > { %2418 = vmatpush1.bf16.msra.mxu0 %v4402_v9  ;;  %2459 = vmatpush1.bf16.msra.mxu1 %v4405_v52  ;;  %v1321_v9 = vpop.permute.xlu0 %1320  ;;  %v4456_v52 = vld [vmem:[%s5716_s3 + $0x2e0] ss:$16 sps:$4 sm:$0xff]  }
 0x276   : > { %2419 = vmatprep.subr.bf16.mxu0 %v4410_v58  ;;  %2460 = vmatprep.subr.bf16.mxu1 %v4413_v21  ;;  %v1356_v58 = vmax.f32 %v5191_v30, %v1321_v9  ;;  %v4464_v21 = vld [vmem:[%s5716_s3 + $0x304] ss:$16 sps:$4 sm:$0xff]   ;;  %v4462_v30 = vld [vmem:[%s5716_s3 + $0x300] ss:$16 sps:$4 sm:$0xff]  }
 0x277   : > { %2449 = vmatprep.mubr.bf16.mxu0 %v4574_v1  ;;  %2490 = vmatprep.mubr.bf16.mxu1 %v4574_v1 }
 0x278   : > { %v1379_v17 = vadd.f32 %v5211_v6, %v1356_v58 }
 0x279   : > { %2420 = vmatpush1.bf16.msra.mxu0 %v4408_v25  ;;  %2461 = vmatpush1.bf16.msra.mxu1 %v4411_v42  ;;  %v4465_v25 = vld [vmem:[%s5716_s3 + $0x308] ss:$16 sps:$4 sm:$0xff]   ;;  %v2920_v42 = vpack.c.bf16 %v1394_v57, %v1394_v57 }
 0x27a   : > { %2556 = vmatprep.subr.bf16.mxu0 %v4416_v56  ;;  %2597 = vmatprep.subr.bf16.mxu1 %v4419_v59  ;;  %v4473_v56 = vld [vmem:[%s5716_s3 + $0x32c] ss:$16 sps:$4 sm:$0xff]   ;;  %v1323_v59 = vpop.permute.xlu1 %1322 }
 0x27b   : > { %v1357_v54 = vmax.f32 %v5196_v29, %v1323_v59  ;;  %v4474_v29 = vld [vmem:[%s5716_s3 + $0x340] ss:$16 sps:$4 sm:$0xff]  }
 0x27c   : > { %4016 = vmatmul.mubr.msk.bf16.vlgmr.msra.gmra.mrb[92].mxu0 %vm1458_vm2, %v2364_v15  ;;  %4017 = vmatmul.mubr.msk.bf16.vlgmr.msra.gmra.mrb[92].mxu1 %vm1458_vm2, %v2364_v15  ;;  %v1395_v15 = vmax.f32 %v1379_v17, 0.0 }
 0x27d   : > { %2557 = vmatpush1.bf16.msra.mxu0 %v4414_v28  ;;  %2598 = vmatpush1.bf16.msra.mxu1 %v4417_v60  ;;  %v4468_v28 = vld [vmem:[%s5716_s3 + $0x320] ss:$16 sps:$4 sm:$0xff]   ;;  %v4471_v60 = vld [vmem:[%s5716_s3 + $0x328] ss:$16 sps:$4 sm:$0xff]  }
 0x27e   : > { %2558 = vmatprep.subr.bf16.mxu0 %v4422_v26  ;;  %2599 = vmatprep.subr.bf16.mxu1 %v4425_v24  ;;  %v4476_v26 = vld [vmem:[%s5716_s3 + $0x344] ss:$16 sps:$4 sm:$0xff]   ;;  %v4479_v24 = vld [vmem:[%s5716_s3 + $0x34c] ss:$16 sps:$4 sm:$0xff]   ;;  %v1327_v23 = vpop.permute.xlu1 %1326 }
 0x27f   : > { %2588 = vmatprep.mubr.bf16.mxu0 %v4574_v1  ;;  %2629 = vmatprep.mubr.bf16.mxu1 %v4574_v1 }
 0x281   : > { %2559 = vmatpush1.bf16.msra.mxu0 %v4420_v0  ;;  %2600 = vmatpush1.bf16.msra.mxu1 %v4423_v2  ;;  %v3059_v0 = vpack.c.bf16 %v1395_v15, %v1395_v15  ;;  %v1380_v2 = vadd.f32 %v5211_v6, %v1357_v54 }
 0x282   : > { %2695 = vmatprep.subr.bf16.mxu0 %v4428_v5  ;;  %2736 = vmatprep.subr.bf16.mxu1 %v4431_v10  ;;  %v1325_v5 = vpop.permute.xlu0 %1324  ;;  %v4480_v10 = vld [vmem:[%s5716_s3 + $0x360] ss:$16 sps:$4 sm:$0xff]  }
 0x284   : > { %4034 = vmatmul.mubr.msk.bf16.vlgmr.msra.gmra.mrb[96].mxu0 %vm1458_vm2, %v2503_v34  ;;  %4035 = vmatmul.mubr.msk.bf16.vlgmr.msra.gmra.mrb[96].mxu1 %vm1458_vm2, %v2503_v34  ;;  %v1358_v34 = vmax.f32 %v5200_v4, %v1325_v5  ;;  %v4486_v4 = vld [vmem:[%s5716_s3 + $0x380] ss:$16 sps:$4 sm:$0xff]  }
 0x285   : > { %2696 = vmatpush1.bf16.msra.mxu0 %v4426_v61  ;;  %2737 = vmatpush1.bf16.msra.mxu1 %v4429_v18  ;;  %v4483_v61 = vld [vmem:[%s5716_s3 + $0x368] ss:$16 sps:$4 sm:$0xff]   ;;  %v1396_v18 = vmax.f32 %v1380_v2, 0.0 }
 0x286   : > { %2697 = vmatprep.subr.bf16.mxu0 %v4434_v20  ;;  %2738 = vmatprep.subr.bf16.mxu1 %v4437_v36  ;;  %v4491_v20 = vld [vmem:[%s5716_s3 + $0x38c] ss:$16 sps:$4 sm:$0xff]   ;;  %v4489_v36 = vld [vmem:[%s5716_s3 + $0x388] ss:$16 sps:$4 sm:$0xff]  }
 0x287   : > { %2727 = vmatprep.mubr.bf16.mxu0 %v4574_v1  ;;  %2768 = vmatprep.mubr.bf16.mxu1 %v4574_v1  ;;  %v3198_v11 = vpack.c.bf16 %v1396_v18, %v1396_v18 }
 0x289   : > { %2698 = vmatpush1.bf16.msra.mxu0 %v4432_v12  ;;  %2739 = vmatpush1.bf16.msra.mxu1 %v4435_v13  ;;  %v1381_v12 = vadd.f32 %v5211_v6, %v1358_v34  ;;  %v4494_v13 = vld [vmem:[%s5716_s3 + $0x3a4] ss:$16 sps:$4 sm:$0xff]  }
 0x28a   : > { %2834 = vmatprep.subr.bf16.mxu0 %v4440_v27  ;;  %2875 = vmatprep.subr.bf16.mxu1 %v4443_v39  ;;  %v4492_v27 = vld [vmem:[%s5716_s3 + $0x3a0] ss:$16 sps:$4 sm:$0xff]   ;;  %v4495_v39 = vld [vmem:[%s5716_s3 + $0x3a8] ss:$16 sps:$4 sm:$0xff]  }
 0x28c   : > { %4052 = vmatmul.mubr.msk.bf16.vlgmr.msra.gmra.mrb[100].mxu0 %vm1458_vm2, %v2642_v41  ;;  %4053 = vmatmul.mubr.msk.bf16.vlgmr.msra.gmra.mrb[100].mxu1 %vm1458_vm2, %v2642_v41  ;;  %v4500_v41 = vld [vmem:[%s5716_s3 + $0x3c4] ss:$16 sps:$4 sm:$0xff]  }
 0x28d   : > { %2835 = vmatpush1.bf16.msra.mxu0 %v4438_v53  ;;  %2876 = vmatpush1.bf16.msra.mxu1 %v4441_v40  ;;  %v1397_v53 = vmax.f32 %v1381_v12, 0.0  ;;  %v1359_v40 = vmax.f32 %v5204_v3, %v1327_v23  ;;  %v4498_v3 = vld [vmem:[%s5716_s3 + $0x3c0] ss:$16 sps:$4 sm:$0xff]  }
 0x28e   : > { %2836 = vmatprep.subr.bf16.mxu0 %v4446_v14  ;;  %2877 = vmatprep.subr.bf16.mxu1 %v4449_v63  ;;  %v4501_v14 = vld [vmem:[%s5716_s3 + $0x3c8] ss:$16 sps:$4 sm:$0xff]  }
 0x28f   : > { %2866 = vmatprep.mubr.bf16.mxu0 %v4574_v1  ;;  %2907 = vmatprep.mubr.bf16.mxu1 %v4574_v1  ;;  %v3337_v63 = vpack.c.bf16 %v1397_v53, %v1397_v53  ;;  %v1382_v16 = vadd.f32 %v5211_v6, %v1359_v40  ;;  %v4504_v6 = vld [vmem:[%s5716_s3 + $0x3e0] ss:$16 sps:$4 sm:$0xff]  }
 0x291   : > { %2837 = vmatpush1.bf16.msra.mxu0 %v4444_v43  ;;  %2878 = vmatpush1.bf16.msra.mxu1 %v4447_v44  ;;  %v4506_v43 = vld [vmem:[%s5716_s3 + $0x3e4] ss:$16 sps:$4 sm:$0xff]   ;;  %v4509_v44 = vld [vmem:[%s5716_s3 + $0x3ec] ss:$16 sps:$4 sm:$0xff]   ;;  %v1398_v33 = vmax.f32 %v1382_v16, 0.0 }
 0x292   : > { %2973 = vmatprep.subr.bf16.mxu0 %v4452_v37  ;;  %3014 = vmatprep.subr.bf16.mxu1 %v4455_v38 }
 0x293   : > { %v3476_v37 = vpack.c.bf16 %v1398_v33, %v1398_v33 }
 0x294   : > { %4070 = vmatmul.mubr.msk.bf16.vlgmr.msra.gmra.mrb[104].mxu0 %vm1458_vm2, %v2781_v49  ;;  %4071 = vmatmul.mubr.msk.bf16.vlgmr.msra.gmra.mrb[104].mxu1 %vm1458_vm2, %v2781_v49 }
 0x295   : > { %2974 = vmatpush1.bf16.msra.mxu0 %v4450_v19  ;;  %3015 = vmatpush1.bf16.msra.mxu1 %v4453_v46 }
 0x296   : > { %2975 = vmatprep.subr.bf16.mxu0 %v4458_v47  ;;  %3016 = vmatprep.subr.bf16.mxu1 %v4461_v48 }
 0x297   : > { %3005 = vmatprep.mubr.bf16.mxu0 %v4574_v1  ;;  %3046 = vmatprep.mubr.bf16.mxu1 %v4574_v1 }
 0x299   : > { %2976 = vmatpush1.bf16.msra.mxu0 %v4456_v52  ;;  %3017 = vmatpush1.bf16.msra.mxu1 %v4459_v51 }
 0x29a   : > { %3112 = vmatprep.subr.bf16.mxu0 %v4464_v21  ;;  %3153 = vmatprep.subr.bf16.mxu1 %v4467_v62 }
 0x29c   : > { %4088 = vmatmul.mubr.msk.bf16.vlgmr.msra.gmra.mrb[108].mxu0 %vm1458_vm2, %v2920_v42  ;;  %4089 = vmatmul.mubr.msk.bf16.vlgmr.msra.gmra.mrb[108].mxu1 %vm1458_vm2, %v2920_v42 }
 0x29d   : > { %3113 = vmatpush1.bf16.msra.mxu0 %v4462_v30  ;;  %3154 = vmatpush1.bf16.msra.mxu1 %v4465_v25 }
 0x29e   : > { %3114 = vmatprep.subr.bf16.mxu0 %v4470_v55  ;;  %3155 = vmatprep.subr.bf16.mxu1 %v4473_v56 }
 0x29f   : > { %3144 = vmatprep.mubr.bf16.mxu0 %v4574_v1  ;;  %3185 = vmatprep.mubr.bf16.mxu1 %v4574_v1 }
 0x2a1   : > { %3115 = vmatpush1.bf16.msra.mxu0 %v4468_v28  ;;  %3156 = vmatpush1.bf16.msra.mxu1 %v4471_v60 }
 0x2a2   : > { %3251 = vmatprep.subr.bf16.mxu0 %v4476_v26  ;;  %3292 = vmatprep.subr.bf16.mxu1 %v4479_v24 }
 0x2a4   : > { %4106 = vmatmul.mubr.msk.bf16.vlgmr.msra.gmra.mrb[112].mxu0 %vm1458_vm2, %v3059_v0  ;;  %4107 = vmatmul.mubr.msk.bf16.vlgmr.msra.gmra.mrb[112].mxu1 %vm1458_vm2, %v3059_v0 }
 0x2a5   : > { %3252 = vmatpush1.bf16.msra.mxu0 %v4474_v29  ;;  %3293 = vmatpush1.bf16.msra.mxu1 %v4477_v31 }
 0x2a6   : > { %3253 = vmatprep.subr.bf16.mxu0 %v4482_v7  ;;  %3294 = vmatprep.subr.bf16.mxu1 %v4485_v8 }
 0x2a7   : > { %3283 = vmatprep.mubr.bf16.mxu0 %v4574_v1  ;;  %3324 = vmatprep.mubr.bf16.mxu1 %v4574_v1 }
 0x2a9   : > { %3254 = vmatpush1.bf16.msra.mxu0 %v4480_v10  ;;  %3295 = vmatpush1.bf16.msra.mxu1 %v4483_v61 }
 0x2aa   : > { %3390 = vmatprep.subr.bf16.mxu0 %v4488_v35  ;;  %3431 = vmatprep.subr.bf16.mxu1 %v4491_v20 }
 0x2ac   : > { %4124 = vmatmul.mubr.msk.bf16.vlgmr.msra.gmra.mrb[116].mxu0 %vm1458_vm2, %v3198_v11  ;;  %4125 = vmatmul.mubr.msk.bf16.vlgmr.msra.gmra.mrb[116].mxu1 %vm1458_vm2, %v3198_v11 }
 0x2ad   : > { %3391 = vmatpush1.bf16.msra.mxu0 %v4486_v4  ;;  %3432 = vmatpush1.bf16.msra.mxu1 %v4489_v36 }
 0x2ae   : > { %3392 = vmatprep.subr.bf16.mxu0 %v4494_v13  ;;  %3433 = vmatprep.subr.bf16.mxu1 %v4497_v22 }
 0x2af   : > { %3422 = vmatprep.mubr.bf16.mxu0 %v4574_v1  ;;  %3463 = vmatprep.mubr.bf16.mxu1 %v4574_v1 }
 0x2b1   : > { %3393 = vmatpush1.bf16.msra.mxu0 %v4492_v27  ;;  %3434 = vmatpush1.bf16.msra.mxu1 %v4495_v39 }
 0x2b2   : > { %3529 = vmatprep.subr.bf16.mxu0 %v4500_v41  ;;  %3570 = vmatprep.subr.bf16.mxu1 %v4503_v32 }
 0x2b4   : > { %4142 = vmatmul.mubr.msk.bf16.vlgmr.msra.gmra.mrb[120].mxu0 %vm1458_vm2, %v3337_v63  ;;  %4143 = vmatmul.mubr.msk.bf16.vlgmr.msra.gmra.mrb[120].mxu1 %vm1458_vm2, %v3337_v63 }
 0x2b5   : > { %3530 = vmatpush1.bf16.msra.mxu0 %v4498_v3  ;;  %3571 = vmatpush1.bf16.msra.mxu1 %v4501_v14 }
 0x2b6   : > { %3531 = vmatprep.subr.bf16.mxu0 %v4506_v43  ;;  %3572 = vmatprep.subr.bf16.mxu1 %v4509_v44 }
 0x2b7   : > { %3561 = vmatprep.mubr.bf16.mxu0 %v4574_v1  ;;  %3602 = vmatprep.mubr.bf16.mxu1 %v4574_v1 }
 0x2b9   : > { %3532 = vmatpush1.bf16.msra.mxu0 %v4504_v6  ;;  %3573 = vmatpush1.bf16.msra.mxu1 %v4507_v45 }
 0x2bc   : > { %4160 = vmatmul.mubr.msk.bf16.vlgmr.msra.gmra.mrb[124].mxu0 %vm1458_vm2, %v3476_v37  ;;  %4161 = vmatmul.mubr.msk.bf16.vlgmr.msra.gmra.mrb[124].mxu1 %vm1458_vm2, %v3476_v37 }
 0x317   : > { %v1496_v38 = vpop.f32.mrb[64].mxu0  ;;  %v1537_v19 = vpop.f32.mrb[64].mxu1 }
 0x318   : > { %v1498_v46 = vpop.f32.mrb[65].mxu0  ;;  %v1539_v49 = vpop.f32.mrb[65].mxu1 }
 0x319   : > { %v1500_v50 = vpop.f32.mrb[66].mxu0  ;;  %v1541_v47 = vpop.f32.mrb[66].mxu1 }
 0x31a   : > { %v1501_v48 = vpop.f32.mrb[67].mxu0  ;;  %v1542_v9 = vpop.f32.mrb[67].mxu1 }
 0x31f   : > { %v1621_v52 = vpop.f32.mrb[68].mxu0  ;;  %v1662_v51 = vpop.f32.mrb[68].mxu1 }
 0x320   : > { %v1622_v57 = vadd.f32 %v1621_v52, %v1496_v38  ;;  %v1663_v58 = vadd.f32 %v1662_v51, %v1537_v19  ;;  %v1623_v1 = vpop.f32.mrb[69].mxu0  ;;  %v1664_v21 = vpop.f32.mrb[69].mxu1 }
 0x321   : > { %v1624_v62 = vadd.f32 %v1623_v1, %v1498_v46  ;;  %v1665_v30 = vadd.f32 %v1664_v21, %v1539_v49  ;;  %v1625_v25 = vpop.f32.mrb[70].mxu0  ;;  %v1666_v42 = vpop.f32.mrb[70].mxu1 }
 0x322   : > { %v1626_v17 = vpop.f32.mrb[71].mxu0  ;;  %v1667_v55 = vpop.f32.mrb[71].mxu1 }
 0x327   : > { %v1756_v56 = vpop.f32.mrb[72].mxu0  ;;  %v1797_v59 = vpop.f32.mrb[72].mxu1 }
 0x328   : > { %v1804_v28 = vadd.f32 %v1756_v56, %v1622_v57  ;;  %v1806_v60 = vadd.f32 %v1797_v59, %v1663_v58  ;;  %v1758_v15 = vpop.f32.mrb[73].mxu0  ;;  %v1799_v54 = vpop.f32.mrb[73].mxu1 }
 0x329   : > { %v1805_v26 = vadd.f32 %v1758_v15, %v1624_v62  ;;  %v1807_v24 = vadd.f32 %v1799_v54, %v1665_v30  ;;  %v1760_v29 = vpop.f32.mrb[74].mxu0  ;;  %v1801_v31 = vpop.f32.mrb[74].mxu1 }
 0x32a   : > { %v1761_v0 = vpop.f32.mrb[75].mxu0  ;;  %v1802_v2 = vpop.f32.mrb[75].mxu1 }
 0x32f   : > { %v1895_v7 = vpop.f32.mrb[76].mxu0  ;;  %v1936_v8 = vpop.f32.mrb[76].mxu1 }
 0x330   : > { %v1943_v5 = vadd.f32 %v1895_v7, %v1804_v28  ;;  %v1945_v10 = vadd.f32 %v1936_v8, %v1806_v60  ;;  %v1897_v61 = vpop.f32.mrb[77].mxu0  ;;  %v1938_v18 = vpop.f32.mrb[77].mxu1 }
 0x331   : > { %v1944_v34 = vadd.f32 %v1897_v61, %v1805_v26  ;;  %v1946_v35 = vadd.f32 %v1938_v18, %v1807_v24  ;;  %v1899_v20 = vpop.f32.mrb[78].mxu0  ;;  %v1940_v4 = vpop.f32.mrb[78].mxu1 }
 0x332   : > { %v1900_v36 = vpop.f32.mrb[79].mxu0  ;;  %v1941_v11 = vpop.f32.mrb[79].mxu1 }
 0x337   : > { %v2034_v12 = vpop.f32.mrb[80].mxu0  ;;  %v2075_v13 = vpop.f32.mrb[80].mxu1 }
 0x338   : > { %v2082_v22 = vadd.f32 %v2034_v12, %v1943_v5  ;;  %v2084_v23 = vadd.f32 %v2075_v13, %v1945_v10  ;;  %v2036_v27 = vpop.f32.mrb[81].mxu0  ;;  %v2077_v39 = vpop.f32.mrb[81].mxu1 }
 0x339   : > { %v2083_v53 = vadd.f32 %v2036_v27, %v1944_v34  ;;  %v2085_v40 = vadd.f32 %v2077_v39, %v1946_v35  ;;  %v2038_v41 = vpop.f32.mrb[82].mxu0  ;;  %v2079_v32 = vpop.f32.mrb[82].mxu1 }
 0x33a   : > { %v2039_v3 = vpop.f32.mrb[83].mxu0  ;;  %v2080_v14 = vpop.f32.mrb[83].mxu1 }
 0x33f   : > { %v2173_v63 = vpop.f32.mrb[84].mxu0  ;;  %v2214_v16 = vpop.f32.mrb[84].mxu1 }
 0x340   : > { %v2221_v43 = vadd.f32 %v2173_v63, %v2082_v22  ;;  %v2223_v44 = vadd.f32 %v2214_v16, %v2084_v23  ;;  %v2175_v6 = vpop.f32.mrb[85].mxu0  ;;  %v2216_v45 = vpop.f32.mrb[85].mxu1 }
 0x341   : > { %v2222_v33 = vadd.f32 %v2175_v6, %v2083_v53  ;;  %v2224_v37 = vadd.f32 %v2216_v45, %v2085_v40  ;;  %v2177_v38 = vpop.f32.mrb[86].mxu0  ;;  %v2218_v19 = vpop.f32.mrb[86].mxu1 }
 0x342   : > { %v2178_v46 = vpop.f32.mrb[87].mxu0  ;;  %v2219_v49 = vpop.f32.mrb[87].mxu1 }
 0x347   : > { %v2312_v50 = vpop.f32.mrb[88].mxu0  ;;  %v2353_v47 = vpop.f32.mrb[88].mxu1 }
 0x348   : > { %v2360_v48 = vadd.f32 %v2312_v50, %v2221_v43  ;;  %v2362_v9 = vadd.f32 %v2353_v47, %v2223_v44  ;;  %v2314_v52 = vpop.f32.mrb[89].mxu0  ;;  %v2355_v51 = vpop.f32.mrb[89].mxu1 }
 0x349   : > { %v2361_v57 = vadd.f32 %v2314_v52, %v2222_v33  ;;  %v2363_v58 = vadd.f32 %v2355_v51, %v2224_v37  ;;  %v2316_v1 = vpop.f32.mrb[90].mxu0  ;;  %v2357_v21 = vpop.f32.mrb[90].mxu1 }
 0x34a   : > { %v2317_v62 = vpop.f32.mrb[91].mxu0  ;;  %v2358_v30 = vpop.f32.mrb[91].mxu1 }
 0x34f   : > { %v2451_v25 = vpop.f32.mrb[92].mxu0  ;;  %v2492_v42 = vpop.f32.mrb[92].mxu1 }
 0x350   : > { %v2499_v17 = vadd.f32 %v2451_v25, %v2360_v48  ;;  %v2501_v55 = vadd.f32 %v2492_v42, %v2362_v9  ;;  %v2453_v56 = vpop.f32.mrb[93].mxu0  ;;  %v2494_v59 = vpop.f32.mrb[93].mxu1 }
 0x351   : > { %v2500_v28 = vadd.f32 %v2453_v56, %v2361_v57  ;;  %v2502_v60 = vadd.f32 %v2494_v59, %v2363_v58  ;;  %v2455_v15 = vpop.f32.mrb[94].mxu0  ;;  %v2496_v54 = vpop.f32.mrb[94].mxu1 }
 0x352   : > { %v2456_v26 = vpop.f32.mrb[95].mxu0  ;;  %v2497_v24 = vpop.f32.mrb[95].mxu1 }
 0x357   : > { %v2590_v29 = vpop.f32.mrb[96].mxu0  ;;  %v2631_v31 = vpop.f32.mrb[96].mxu1 }
 0x358   : > { %v2638_v0 = vadd.f32 %v2590_v29, %v2499_v17  ;;  %v2640_v2 = vadd.f32 %v2631_v31, %v2501_v55  ;;  %v2592_v7 = vpop.f32.mrb[97].mxu0  ;;  %v2633_v8 = vpop.f32.mrb[97].mxu1 }
 0x359   : > { %v2639_v5 = vadd.f32 %v2592_v7, %v2500_v28  ;;  %v2641_v10 = vadd.f32 %v2633_v8, %v2502_v60  ;;  %v2594_v61 = vpop.f32.mrb[98].mxu0  ;;  %v2635_v18 = vpop.f32.mrb[98].mxu1 }
 0x35a   : > { %v2595_v34 = vpop.f32.mrb[99].mxu0  ;;  %v2636_v35 = vpop.f32.mrb[99].mxu1  ;;  %v3617_v61 = vlaneseq }
 0x35c   : > { %v3618_v18 = vshrl.u32 %v3617_v61, 7 }
 0x35f   : > { %v2729_v20 = vpop.f32.mrb[100].mxu0  ;;  %v2770_v4 = vpop.f32.mrb[100].mxu1 }
 0x360   : > { %v2777_v36 = vadd.f32 %v2729_v20, %v2638_v0  ;;  %v2779_v11 = vadd.f32 %v2770_v4, %v2640_v2  ;;  %v2731_v12 = vpop.f32.mrb[101].mxu0  ;;  %v2772_v13 = vpop.f32.mrb[101].mxu1 }
 0x361   : > { %v2778_v22 = vadd.f32 %v2731_v12, %v2639_v5  ;;  %v2780_v23 = vadd.f32 %v2772_v13, %v2641_v10  ;;  %v2733_v27 = vpop.f32.mrb[102].mxu0  ;;  %v2774_v39 = vpop.f32.mrb[102].mxu1 }
 0x362   : > { %v2734_v53 = vpop.f32.mrb[103].mxu0  ;;  %v2775_v40 = vpop.f32.mrb[103].mxu1 }
 0x363   : > { %v3619_v53 = vsub.s32 0, %v3618_v18  ;;  %v3627_v40 = vsub.s32 2, %v3618_v18 }
 0x367   : > { %v2868_v41 = vpop.f32.mrb[104].mxu0  ;;  %v2909_v32 = vpop.f32.mrb[104].mxu1 }
 0x368   : > { %v2916_v3 = vadd.f32 %v2868_v41, %v2777_v36  ;;  %v2918_v14 = vadd.f32 %v2909_v32, %v2779_v11  ;;  %v2870_v63 = vpop.f32.mrb[105].mxu0  ;;  %v2911_v16 = vpop.f32.mrb[105].mxu1  ;;  %v3615_v41 = vld [vmem:[%s5717_s4] sm:$0xf]  ;;  %v3623_v32 = vsub.s32 1, %v3618_v18 }
 0x369   : > { %v2917_v43 = vadd.f32 %v2870_v63, %v2778_v22  ;;  %v2919_v44 = vadd.f32 %v2911_v16, %v2780_v23  ;;  %v2872_v6 = vpop.f32.mrb[106].mxu0  ;;  %v2913_v45 = vpop.f32.mrb[106].mxu1  ;;  %v3628_v63 = vrot.slane %v3615_v41, %v3627_v40 }
 0x36a   : > { %v2873_v33 = vpop.f32.mrb[107].mxu0  ;;  %v2914_v37 = vpop.f32.mrb[107].mxu1 }
 0x36f   : > { %v3007_v38 = vpop.f32.mrb[108].mxu0  ;;  %v3048_v19 = vpop.f32.mrb[108].mxu1 }
 0x370   : > { %v3055_v46 = vadd.f32 %v3007_v38, %v2916_v3  ;;  %v3057_v49 = vadd.f32 %v3048_v19, %v2918_v14  ;;  %v3009_v50 = vpop.f32.mrb[109].mxu0  ;;  %v3050_v47 = vpop.f32.mrb[109].mxu1  ;;  %v3631_v3 = vsub.s32 3, %v3618_v18  ;;  %v3620_v14 = vrot.slane %v3615_v41, %v3619_v53 }
 0x371   : > { %v3056_v48 = vadd.f32 %v3009_v50, %v2917_v43  ;;  %v3058_v9 = vadd.f32 %v3050_v47, %v2919_v44  ;;  %v3011_v52 = vpop.f32.mrb[110].mxu0  ;;  %v3052_v51 = vpop.f32.mrb[110].mxu1  ;;  %v3624_v44 = vrot.slane %v3615_v41, %v3623_v32 }
 0x372   : > { %v3012_v57 = vpop.f32.mrb[111].mxu0  ;;  %v3053_v58 = vpop.f32.mrb[111].mxu1  ;;  %v3632_v6 = vrot.slane %v3615_v41, %v3631_v3 }
 0x377   : > { %v3146_v1 = vpop.f32.mrb[112].mxu0  ;;  %v3187_v21 = vpop.f32.mrb[112].mxu1 }
 0x378   : > { %v3194_v62 = vadd.f32 %v3146_v1, %v3055_v46  ;;  %v3196_v30 = vadd.f32 %v3187_v21, %v3057_v49  ;;  %v3148_v25 = vpop.f32.mrb[113].mxu0  ;;  %v3189_v42 = vpop.f32.mrb[113].mxu1 }
 0x379   : > { %v3195_v17 = vadd.f32 %v3148_v25, %v3056_v48  ;;  %v3197_v55 = vadd.f32 %v3189_v42, %v3058_v9  ;;  %v3150_v56 = vpop.f32.mrb[114].mxu0  ;;  %v3191_v59 = vpop.f32.mrb[114].mxu1 }
 0x37a   : > { %v3151_v28 = vpop.f32.mrb[115].mxu0  ;;  %v3192_v60 = vpop.f32.mrb[115].mxu1 }
 0x37f   : > { %v3285_v15 = vpop.f32.mrb[116].mxu0  ;;  %v3326_v54 = vpop.f32.mrb[116].mxu1 }
 0x380   : > { %v3333_v26 = vadd.f32 %v3285_v15, %v3194_v62  ;;  %v3335_v24 = vadd.f32 %v3326_v54, %v3196_v30  ;;  %v3287_v29 = vpop.f32.mrb[117].mxu0  ;;  %v3328_v31 = vpop.f32.mrb[117].mxu1 }
 0x381   : > { %v3334_v0 = vadd.f32 %v3287_v29, %v3195_v17  ;;  %v3336_v2 = vadd.f32 %v3328_v31, %v3197_v55  ;;  %v3289_v7 = vpop.f32.mrb[118].mxu0  ;;  %v3330_v8 = vpop.f32.mrb[118].mxu1 }
 0x382   : > { %v3290_v5 = vpop.f32.mrb[119].mxu0  ;;  %v3331_v10 = vpop.f32.mrb[119].mxu1 }
 0x387   : > { %v3424_v34 = vpop.f32.mrb[120].mxu0  ;;  %v3465_v35 = vpop.f32.mrb[120].mxu1 }
 0x388   : > { %v3472_v20 = vadd.f32 %v3424_v34, %v3333_v26  ;;  %v3474_v4 = vadd.f32 %v3465_v35, %v3335_v24  ;;  %v3426_v36 = vpop.f32.mrb[121].mxu0  ;;  %v3467_v11 = vpop.f32.mrb[121].mxu1 }
 0x389   : > { %v3473_v12 = vadd.f32 %v3426_v36, %v3334_v0  ;;  %v3475_v13 = vadd.f32 %v3467_v11, %v3336_v2  ;;  %v3428_v22 = vpop.f32.mrb[122].mxu0  ;;  %v3469_v23 = vpop.f32.mrb[122].mxu1 }
 0x38a   : > { %v3429_v27 = vpop.f32.mrb[123].mxu0  ;;  %v3470_v39 = vpop.f32.mrb[123].mxu1 }
 0x38f   : > { %v3563_v16 = vpop.f32.mrb[124].mxu0  ;;  %v3604_v43 = vpop.f32.mrb[124].mxu1 }
 0x390   : > { %v3611_v45 = vadd.f32 %v3563_v16, %v3472_v20  ;;  %v3613_v33 = vadd.f32 %v3604_v43, %v3474_v4  ;;  %v3565_v37 = vpop.f32.mrb[125].mxu0  ;;  %v3606_v38 = vpop.f32.mrb[125].mxu1 }
 0x391   : > { %v3612_v19 = vadd.f32 %v3565_v37, %v3473_v12  ;;  %v3614_v46 = vadd.f32 %v3606_v38, %v3475_v13  ;;  %v3567_v49 = vpop.f32.mrb[126].mxu0  ;;  %v3608_v50 = vpop.f32.mrb[126].mxu1 }
 0x392   : > { %v3637_v47 = vadd.f32 %v3620_v14, %v3611_v45  ;;  %v3639_v48 = vadd.f32 %v3628_v63, %v3613_v33  ;;  %v3568_v9 = vpop.f32.mrb[127].mxu0  ;;  %v3609_v52 = vpop.f32.mrb[127].mxu1 }
 0x393   : > { %v3638_v51 = vadd.f32 %v3624_v44, %v3612_v19  ;;  %v3640_v57 = vadd.f32 %v3632_v6, %v3614_v46 }
 0x394   : > { %3641 = vst [vmem:[%s217_s9] sm:$0xff] %v3637_v47  ;;  %3643 = vst [vmem:[%s217_s9 + $0x10] sm:$0xff] %v3639_v48 }
 0x395   : > { %3642 = vst [vmem:[%s217_s9 + $0x8] sm:$0xff] %v3638_v51  ;;  %3644 = vst [vmem:[%s217_s9 + $0x18] sm:$0xff] %v3640_v57 }
 0x396   : > { %4523 = shalt.err (!%p4520_p3)
}
 0x397   : > { %s4524_s25 = scalar_lea.hbm %s5669_s13, 512  ;;  %s4528_s6 = scalar_lea.hbm %s5718_s5, 1024 }
 0x398   : > { %p4525_p4 = scmp.ne.s32.totalorder %s5669_s13, %s4524_s25  ;;  %p4529_p9 = scmp.lt.u32.totalorder %s5669_s13, %s5718_s5 }
 0x399   : > { %p4530_p10 = scmp.lt.u32.totalorder %s4528_s6, %s4524_s25  ;;  %p4532_p12 = scmp.lt.u32.totalorder %s4524_s25, %s5669_s13 }
 0x39a   : > { %p4526_p7 = pnand %p4525_p4, %p4646_p5 }
 0x39b   : > { %p4531_p11 = por %p4530_p10, %p4529_p9 }
 0x39c   : > { %p4527_p8 = pneg %p4526_p7 }
 0x39d   : > { %p4533_p13 = por %p4532_p12, %p4531_p11 }
 0x39f   : > { %p4534_p0 = pnand %p4533_p13, %p4527_p8 }
 0x3a1   : > { %4537 = shalt.err (!%p4534_p0)
}
 0x3a2   : > { %4169 = dma.vmem_to_hbm [thread:$0]  (%p4646_p5), %s5671_s10, 512, %s5669_s13, %s3646_s22  }
 0x3a3 PF: > { %p4175_p1 = scmp.ge.s32.totalorder %s4572_s21, 2  ;;  %s3672_s8 = sand.u32 1, %s4560_s18  }
 0x3a4   : > { %s3673_s9 = scalar_lea.sflag [#allocation3], %s3672_s8 }
 0x3a5   : > { %p4172_p2 = pnand %p4175_p1, %p4650_p6 }
 0x3a7   : > { %4555 = dma.done.wait (!%p4172_p2), %s3673_s9, 512  }
 0x3a8   : > { %4557 = vsyncadd (!%p4172_p2), %s3673_s9, 4294966784  ;;  %p15_p3 = scmp.ge.s32.totalorder %s4633_s24, 4   ;;  %s5721_s18 = smov %s4564_s19 }
 0x3a9   : > { %s5722_s19 = smov %s4568_s20  ;;  %s5723_s20 = smov %s4644_s27 }
 0x3aa   : > { %s5724_s21 = smov %s4633_s24  ;;  %17 = sbr.rel (!%p15_p3) target bundleno = 3 (0x3), region = 93 }
 0x3b1   :  { %3678 = vsyncpa [#allocation3], 1 }
 0x3b2   :  { %3680 = vsyncpa [#allocation3 + $0x1], 1 }

</bundles_post_ra>
